<compile_context>
chip_gen: v7x
topology: tpu7x:2x2x1
jax: 0.10.0
libtpu: 0.0.40
codegen_flags: <defaults>
</compile_context>

<pallas_src>
import math

import jax
import jax.numpy as jnp
from jax import lax
from jax.experimental import pallas as pl
from jax.experimental.pallas import tpu as pltpu  # noqa: F401  (TPU backend)

# ---------------- configuration (small, deterministic) ----------------
VOCAB = 128
HIDDEN = 32                # decoder_hidden_size == Qwen2 hidden_size
ENC_HIDDEN = 32            # encoder_hidden_size (== HIDDEN so merged embeds match)
PROJ_HEADS = 1             # projector_config.multihead = False -> num_heads = 1
N_LAYERS = 2
N_HEADS = 4
HEAD_DIM = HIDDEN // N_HEADS
HALF = HEAD_DIM // 2
INTERMEDIATE = 64
RMS_EPS = 1e-6
ROPE_THETA = 10000.0
INSERT_TOKEN_ID = 5        # config.encoder_config.insert_embs_token_id
SEQ = 8
N_TABLE_TOKENS = 3         # _TABLE_TOKEN_COUNT_PER_COL * 1 column
PARAM_DTYPE = jnp.bfloat16
F32 = jnp.float32
NEG_INF = -1e30            # f32 mask constant (softmax math stays f32)


# ---------------- in-kernel helpers ----------------
def _rmsnorm(x, w):
    var = jnp.mean(x * x, axis=-1, keepdims=True)
    return x * lax.rsqrt(var + RMS_EPS) * w.astype(F32)


def _rope(x, cos_full, sin_signed):
    # NeoX rotary: out = x*[cos,cos] + [x2,x1]*[-sin,sin]  (x: [T, HEAD_DIM] f32)
    rot = jnp.concatenate([x[:, HALF:], x[:, :HALF]], axis=-1)
    return x * cos_full + rot * sin_signed


# ---------------- single fused forward kernel ----------------
def _forward_kernel(ids_col_ref, ids_row_ref, table_ref,
                    pw1_ref, pb1_ref, pw2_ref, pb2_ref,
                    embed_ref, cos_ref, sin_ref,
                    ln1_ref, wqkv_ref, bqkv_ref, wo_ref,
                    ln2_ref, wgu_ref, wd_ref, fnorm_ref,
                    o_ref):
    # ---------- projector: Linear -> GELU -> Linear ----------
    t = table_ref[...]                                                     # bf16 [NT, ENC]
    h1 = jnp.dot(t, pw1_ref[...], preferred_element_type=F32) + pb1_ref[...].astype(F32)
    # TODO(synk): torch nn.GELU() defaults to exact erf-GELU; Mosaic has no erf
    #             lowering, so the tanh approximation is used here.
    h1 = jax.nn.gelu(h1, approximate=True)
    table_embeds = (jnp.dot(h1.astype(PARAM_DTYPE), pw2_ref[...],
                            preferred_element_type=F32)
                    + pb2_ref[...].astype(F32))                            # f32 [NT, HIDDEN]

    # ---------- input embeddings with clamp(min=0), via one-hot matmul ----------
    ids_col = ids_col_ref[...]                                             # int32 [SEQ, 1]
    ids_clamped = jnp.maximum(ids_col, 0)
    vocab_iota = lax.broadcasted_iota(jnp.int32, (SEQ, VOCAB), 1)
    one_hot = (vocab_iota == ids_clamped).astype(PARAM_DTYPE)              # [SEQ, VOCAB]
    inp_embeds = jnp.dot(one_hot, embed_ref[...], preferred_element_type=F32)

    # ---------- merge_multimodal_embeddings (in-order replacement) ----------
    row = lax.broadcasted_iota(jnp.int32, (SEQ, SEQ), 0)
    col = lax.broadcasted_iota(jnp.int32, (SEQ, SEQ), 1)
    causal = col <= row                                                    # reused for attention
    mask_col = ids_col == INSERT_TOKEN_ID                                  # bool [SEQ, 1]
    mask_row_f = (ids_row_ref[...] == INSERT_TOKEN_ID).astype(F32)         # f32  [1, SEQ]
    cum = jnp.sum(jnp.where(causal, mask_row_f, 0.0), axis=-1, keepdims=True)
    idx = cum.astype(jnp.int32) - 1                                        # [SEQ, 1]
    tbl_iota = lax.broadcasted_iota(jnp.int32, (SEQ, N_TABLE_TOKENS), 1)
    sel = jnp.where((tbl_iota == idx) & mask_col, 1.0, 0.0)                # f32 [SEQ, NT]
    gathered = sel[:, 0:1] * table_embeds[0:1, :]
    for j in range(1, N_TABLE_TOKENS):
        gathered = gathered + sel[:, j:j + 1] * table_embeds[j:j + 1, :]
    mask_f = mask_col.astype(F32)
    h = inp_embeds * (1.0 - mask_f) + gathered                             # f32 [SEQ, HIDDEN]

    # ---------- Qwen2 decoder layers (unrolled, weights stacked [L, ...]) ----------
    cos_full = cos_ref[...]                                                # f32 [SEQ, HEAD_DIM]
    sin_signed = sin_ref[...]
    scale = 1.0 / math.sqrt(HEAD_DIM)

    for l in range(N_LAYERS):
        # --- self-attention block ---
        x = _rmsnorm(h, ln1_ref[l])
        qkv = (jnp.dot(x.astype(PARAM_DTYPE), wqkv_ref[l],
                       preferred_element_type=F32)
               + bqkv_ref[l].astype(F32))                                  # [SEQ, 3*HIDDEN]
        wo_l = wo_ref[l]                                                   # bf16 [HIDDEN, HIDDEN]
        attn_out = jnp.zeros((SEQ, HIDDEN), F32)
        for hd in range(N_HEADS):
            lo = hd * HEAD_DIM
            q_h = _rope(qkv[:, lo:lo + HEAD_DIM], cos_full, sin_signed)
            k_h = _rope(qkv[:, HIDDEN + lo:HIDDEN + lo + HEAD_DIM], cos_full, sin_signed)
            v_h = qkv[:, 2 * HIDDEN + lo:2 * HIDDEN + lo + HEAD_DIM]
            # Q.K^T without explicit transpose (contract last dims)
            s = lax.dot_general(q_h.astype(PARAM_DTYPE), k_h.astype(PARAM_DTYPE),
                                (((1,), (1,)), ((), ())),
                                preferred_element_type=F32) * scale
            s = jnp.where(causal, s, NEG_INF)                              # f32 mask / softmax
            m = jnp.max(s, axis=-1, keepdims=True)
            p = jnp.exp(s - m)
            p = p * pl.reciprocal(jnp.sum(p, axis=-1, keepdims=True), approx=True)
            o_h = jnp.dot(p.astype(PARAM_DTYPE), v_h.astype(PARAM_DTYPE),
                          preferred_element_type=F32)                      # [SEQ, HEAD_DIM]
            # per-head o_proj contribution (== concat(heads) @ wo, no concat needed)
            attn_out = attn_out + jnp.dot(o_h.astype(PARAM_DTYPE),
                                          wo_l[lo:lo + HEAD_DIM, :],
                                          preferred_element_type=F32)
        h = h + attn_out                                                   # o_proj has no bias

        # --- MLP block (SwiGLU, fused gate+up) ---
        x = _rmsnorm(h, ln2_ref[l])
        gu = jnp.dot(x.astype(PARAM_DTYPE), wgu_ref[l], preferred_element_type=F32)
        g = gu[:, :INTERMEDIATE]
        u = gu[:, INTERMEDIATE:]
        act = g * jax.nn.sigmoid(g) * u
        h = h + jnp.dot(act.astype(PARAM_DTYPE), wd_ref[l], preferred_element_type=F32)

    o_ref[...] = _rmsnorm(h, fnorm_ref[...]).astype(o_ref.dtype)


# ---------------- wrapper (plain JAX glue: RoPE tables + layout only) ----------------
def _precompute_rope(positions):
    inv_freq = 1.0 / (ROPE_THETA ** (jnp.arange(HALF, dtype=F32) / HALF))
    freqs = positions.astype(F32)[:, None] * inv_freq[None, :]             # [T, HALF]
    cos = jnp.cos(freqs)
    sin = jnp.sin(freqs)
    cos_full = jnp.concatenate([cos, cos], axis=-1)                        # [T, HEAD_DIM]
    sin_signed = jnp.concatenate([-sin, sin], axis=-1)                     # [T, HEAD_DIM]
    return cos_full, sin_signed


def forward(params, input_ids, positions, table):
    cos_full, sin_signed = _precompute_rope(positions)                    # computed once
    ids_col = input_ids.reshape(SEQ, 1).astype(jnp.int32)
    ids_row = input_ids.reshape(1, SEQ).astype(jnp.int32)
    return pl.pallas_call(
        _forward_kernel,
        out_shape=jax.ShapeDtypeStruct((SEQ, HIDDEN), F32),
    )(ids_col, ids_row, table,
      params["p_w1"], params["p_b1"], params["p_w2"], params["p_b2"],
      params["embed_tokens"], cos_full, sin_signed,
      params["ln1"], params["wqkv"], params["bqkv"], params["wo"],
      params["ln2"], params["wgu"], params["wd"], params["final_norm"])


# ---------------- deterministic parameter init (bf16, stacked per layer) ----------------
def init_params(key):
    keys = iter(jax.random.split(key, 64))

    def w(shape, scale=0.02):
        return (scale * jax.random.normal(next(keys), shape, dtype=F32)).astype(PARAM_DTYPE)

    def stack(fn):
        return jnp.stack([fn() for _ in range(N_LAYERS)], axis=0)

    params = {
        "embed_tokens": w((VOCAB, HIDDEN)),
        "final_norm": jnp.ones((1, HIDDEN), PARAM_DTYPE),
        # projector: nn.Linear(enc, dec*nh) -> GELU -> nn.Linear(dec*nh, enc*nh)
        "p_w1": w((ENC_HIDDEN, HIDDEN * PROJ_HEADS)),
        "p_b1": w((1, HIDDEN * PROJ_HEADS)),
        "p_w2": w((HIDDEN * PROJ_HEADS, ENC_HIDDEN * PROJ_HEADS)),
        "p_b2": w((1, ENC_HIDDEN * PROJ_HEADS)),
        # decoder layers, stacked [L, ...]
        "ln1": jnp.ones((N_LAYERS, 1, HIDDEN), PARAM_DTYPE),
        "ln2": jnp.ones((N_LAYERS, 1, HIDDEN), PARAM_DTYPE),
        "wqkv": stack(lambda: jnp.concatenate(                 # fused [q | k | v]
            [w((HIDDEN, N_HEADS * HEAD_DIM)) for _ in range(3)], axis=1)),
        "bqkv": stack(lambda: jnp.concatenate(
            [w((1, N_HEADS * HEAD_DIM)) for _ in range(3)], axis=1)),
        "wo": stack(lambda: w((N_HEADS * HEAD_DIM, HIDDEN))),  # o_proj: no bias in Qwen2
        "wgu": stack(lambda: jnp.concatenate(                  # fused [gate | up]
            [w((HIDDEN, INTERMEDIATE)) for _ in range(2)], axis=1)),
        "wd": stack(lambda: w((INTERMEDIATE, HIDDEN))),
    }
    return params


if __name__ == "__main__":
    key = jax.random.PRNGKey(0)
    pkey, tkey = jax.random.split(key)
    params = init_params(pkey)

    # 3 table-insert tokens in the prompt, matching N_TABLE_TOKENS.
    input_ids = jnp.array(
        [7, INSERT_TOKEN_ID, INSERT_TOKEN_ID, INSERT_TOKEN_ID, 11, 23, 42, 99],
        dtype=jnp.int32,
    )
    positions = jnp.arange(SEQ, dtype=jnp.int32)
    table = (0.05 * jax.random.normal(tkey, (N_TABLE_TOKENS, ENC_HIDDEN))).astype(PARAM_DTYPE)

    hidden_states = jax.jit(forward)(params, input_ids, positions, table)
    jax.block_until_ready(hidden_states)

    assert hidden_states.shape == (SEQ, HIDDEN)
    assert bool(jnp.all(jnp.isfinite(hidden_states)))
    print("KERNEL_OK")
</pallas_src>

<mosaic_0001>
module attributes {stable_mosaic.version = 11 : i64} {
  func.func @_forward_kernel(%arg0: memref<8x1xi32, #tpu.memory_space<vmem>>, %arg1: memref<1x8xi32, #tpu.memory_space<vmem>>, %arg2: memref<3x32xbf16, #tpu.memory_space<vmem>>, %arg3: memref<32x32xbf16, #tpu.memory_space<vmem>>, %arg4: memref<1x32xbf16, #tpu.memory_space<vmem>>, %arg5: memref<32x32xbf16, #tpu.memory_space<vmem>>, %arg6: memref<1x32xbf16, #tpu.memory_space<vmem>>, %arg7: memref<128x32xbf16, #tpu.memory_space<vmem>>, %arg8: memref<8x8xf32, #tpu.memory_space<vmem>>, %arg9: memref<8x8xf32, #tpu.memory_space<vmem>>, %arg10: memref<2x1x32xbf16, #tpu.memory_space<vmem>>, %arg11: memref<2x32x96xbf16, #tpu.memory_space<vmem>>, %arg12: memref<2x1x96xbf16, #tpu.memory_space<vmem>>, %arg13: memref<2x32x32xbf16, #tpu.memory_space<vmem>>, %arg14: memref<2x1x32xbf16, #tpu.memory_space<vmem>>, %arg15: memref<2x32x128xbf16, #tpu.memory_space<vmem>>, %arg16: memref<2x64x32xbf16, #tpu.memory_space<vmem>>, %arg17: memref<1x32xbf16, #tpu.memory_space<vmem>>, %arg18: memref<8x32xf32, #tpu.memory_space<vmem>>) attributes {dimension_semantics = [], scalar_prefetch = 0 : i64, scratch_operands = 0 : i64, tpu.core_type = #tpu.core_type<tc>} {
    %c0 = arith.constant 0 : index
    %c0_0 = arith.constant 0 : index
    %0 = vector.load %arg2[%c0, %c0_0] : memref<3x32xbf16, #tpu.memory_space<vmem>>, vector<3x32xbf16>
    %c0_1 = arith.constant 0 : index
    %c0_2 = arith.constant 0 : index
    %1 = vector.load %arg3[%c0_1, %c0_2] : memref<32x32xbf16, #tpu.memory_space<vmem>>, vector<32x32xbf16>
    %cst = arith.constant dense<0.000000e+00> : vector<3x32xf32>
    %2 = tpu.matmul %0, %1, %cst {dimension_numbers = #tpu.dot_dimension_numbers<[1], [0], [0], [1], [0, 0, 1, 1], [], []>} : vector<3x32xbf16>, vector<32x32xbf16>, vector<3x32xf32> -> vector<3x32xf32>
    %c0_3 = arith.constant 0 : index
    %c0_4 = arith.constant 0 : index
    %3 = vector.load %arg4[%c0_3, %c0_4] : memref<1x32xbf16, #tpu.memory_space<vmem>>, vector<1x32xbf16>
    %4 = arith.extf %3 : vector<1x32xbf16> to vector<1x32xf32>
    %5 = vector.broadcast %4 : vector<1x32xf32> to vector<3x32xf32>
    %6 = arith.addf %2, %5 : vector<3x32xf32>
    %7 = arith.mulf %6, %6 : vector<3x32xf32>
    %8 = arith.mulf %6, %7 : vector<3x32xf32>
    %cst_5 = arith.constant 4.471500e-02 : f32
    %9 = vector.broadcast %cst_5 : f32 to vector<3x32xf32>
    %10 = arith.mulf %9, %8 : vector<3x32xf32>
    %11 = arith.addf %6, %10 : vector<3x32xf32>
    %cst_6 = arith.constant 0.797884583 : f32
    %12 = vector.broadcast %cst_6 : f32 to vector<3x32xf32>
    %13 = arith.mulf %12, %11 : vector<3x32xf32>
    %14 = math.tanh %13 : vector<3x32xf32>
    %cst_7 = arith.constant 1.000000e+00 : f32
    %15 = vector.broadcast %cst_7 : f32 to vector<3x32xf32>
    %16 = arith.addf %15, %14 : vector<3x32xf32>
    %cst_8 = arith.constant 5.000000e-01 : f32
    %17 = vector.broadcast %cst_8 : f32 to vector<3x32xf32>
    %18 = arith.mulf %17, %16 : vector<3x32xf32>
    %19 = arith.mulf %6, %18 : vector<3x32xf32>
    %20 = arith.truncf %19 : vector<3x32xf32> to vector<3x32xbf16>
    %c0_9 = arith.constant 0 : index
    %c0_10 = arith.constant 0 : index
    %21 = vector.load %arg5[%c0_9, %c0_10] : memref<32x32xbf16, #tpu.memory_space<vmem>>, vector<32x32xbf16>
    %cst_11 = arith.constant dense<0.000000e+00> : vector<3x32xf32>
    %22 = tpu.matmul %20, %21, %cst_11 {dimension_numbers = #tpu.dot_dimension_numbers<[1], [0], [0], [1], [0, 0, 1, 1], [], []>} : vector<3x32xbf16>, vector<32x32xbf16>, vector<3x32xf32> -> vector<3x32xf32>
    %c0_12 = arith.constant 0 : index
    %c0_13 = arith.constant 0 : index
    %23 = vector.load %arg6[%c0_12, %c0_13] : memref<1x32xbf16, #tpu.memory_space<vmem>>, vector<1x32xbf16>
    %24 = arith.extf %23 : vector<1x32xbf16> to vector<1x32xf32>
    %25 = vector.broadcast %24 : vector<1x32xf32> to vector<3x32xf32>
    %26 = arith.addf %22, %25 : vector<3x32xf32>
    %c0_14 = arith.constant 0 : index
    %c0_15 = arith.constant 0 : index
    %27 = vector.load %arg0[%c0_14, %c0_15] : memref<8x1xi32, #tpu.memory_space<vmem>>, vector<8x1xi32>
    %c0_i32 = arith.constant 0 : i32
    %28 = vector.broadcast %c0_i32 : i32 to vector<8x1xi32>
    %29 = arith.maxsi %27, %28 : vector<8x1xi32>
    %30 = tpu.iota {dimensions = array<i32: 1>} : vector<8x128xi32>
    %31 = vector.broadcast %29 : vector<8x1xi32> to vector<8x128xi32>
    %32 = arith.cmpi eq, %30, %31 : vector<8x128xi32>
    %33 = arith.extui %32 : vector<8x128xi1> to vector<8x128xi32>
    %34 = arith.sitofp %33 : vector<8x128xi32> to vector<8x128xf32>
    %35 = arith.truncf %34 : vector<8x128xf32> to vector<8x128xbf16>
    %c0_16 = arith.constant 0 : index
    %c0_17 = arith.constant 0 : index
    %36 = vector.load %arg7[%c0_16, %c0_17] : memref<128x32xbf16, #tpu.memory_space<vmem>>, vector<128x32xbf16>
    %cst_18 = arith.constant dense<0.000000e+00> : vector<8x32xf32>
    %37 = tpu.matmul %35, %36, %cst_18 {dimension_numbers = #tpu.dot_dimension_numbers<[1], [0], [0], [1], [0, 0, 1, 1], [], []>} : vector<8x128xbf16>, vector<128x32xbf16>, vector<8x32xf32> -> vector<8x32xf32>
    %38 = tpu.iota {dimensions = array<i32: 0>} : vector<8x8xi32>
    %39 = tpu.iota {dimensions = array<i32: 1>} : vector<8x8xi32>
    %40 = arith.cmpi sle, %39, %38 : vector<8x8xi32>
    %c5_i32 = arith.constant 5 : i32
    %41 = vector.broadcast %c5_i32 : i32 to vector<8x1xi32>
    %42 = arith.cmpi eq, %27, %41 : vector<8x1xi32>
    %c0_19 = arith.constant 0 : index
    %c0_20 = arith.constant 0 : index
    %43 = vector.load %arg1[%c0_19, %c0_20] : memref<1x8xi32, #tpu.memory_space<vmem>>, vector<1x8xi32>
    %c5_i32_21 = arith.constant 5 : i32
    %44 = vector.broadcast %c5_i32_21 : i32 to vector<1x8xi32>
    %45 = arith.cmpi eq, %43, %44 : vector<1x8xi32>
    %46 = arith.extui %45 : vector<1x8xi1> to vector<1x8xi32>
    %47 = arith.sitofp %46 : vector<1x8xi32> to vector<1x8xf32>
    %cst_22 = arith.constant 0.000000e+00 : f32
    %48 = vector.shape_cast %47 : vector<1x8xf32> to vector<1x8xf32>
    %49 = vector.broadcast %48 : vector<1x8xf32> to vector<8x8xf32>
    %50 = vector.broadcast %cst_22 : f32 to vector<8x8xf32>
    %51 = arith.select %40, %49, %50 : vector<8x8xi1>, vector<8x8xf32>
    %cst_23 = arith.constant dense<0.000000e+00> : vector<8xf32>
    %52 = vector.multi_reduction <add>, %51, %cst_23 [1] : vector<8x8xf32> to vector<8xf32>
    %53 = vector.shape_cast %52 : vector<8xf32> to vector<8x1xf32>
    %54 = arith.fptosi %53 : vector<8x1xf32> to vector<8x1xi32>
    %c1_i32 = arith.constant 1 : i32
    %55 = vector.broadcast %c1_i32 : i32 to vector<8x1xi32>
    %56 = arith.subi %54, %55 : vector<8x1xi32>
    %57 = tpu.iota {dimensions = array<i32: 1>} : vector<8x3xi32>
    %58 = vector.broadcast %56 : vector<8x1xi32> to vector<8x3xi32>
    %59 = arith.cmpi eq, %57, %58 : vector<8x3xi32>
    %60 = vector.broadcast %42 : vector<8x1xi1> to vector<8x3xi1>
    %61 = arith.andi %59, %60 : vector<8x3xi1>
    %cst_24 = arith.constant 1.000000e+00 : f32
    %cst_25 = arith.constant 0.000000e+00 : f32
    %62 = vector.broadcast %cst_24 : f32 to vector<8x3xf32>
    %63 = vector.broadcast %cst_25 : f32 to vector<8x3xf32>
    %64 = arith.select %61, %62, %63 : vector<8x3xi1>, vector<8x3xf32>
    %65 = vector.extract_strided_slice %64 {offsets = [0, 0], sizes = [8, 1], strides = [1, 1]} : vector<8x3xf32> to vector<8x1xf32>
    %66 = vector.extract_strided_slice %26 {offsets = [0, 0], sizes = [1, 32], strides = [1, 1]} : vector<3x32xf32> to vector<1x32xf32>
    %67 = vector.broadcast %65 : vector<8x1xf32> to vector<8x32xf32>
    %68 = vector.broadcast %66 : vector<1x32xf32> to vector<8x32xf32>
    %69 = arith.mulf %67, %68 : vector<8x32xf32>
    %70 = vector.extract_strided_slice %64 {offsets = [0, 1], sizes = [8, 1], strides = [1, 1]} : vector<8x3xf32> to vector<8x1xf32>
    %71 = vector.extract_strided_slice %26 {offsets = [1, 0], sizes = [1, 32], strides = [1, 1]} : vector<3x32xf32> to vector<1x32xf32>
    %72 = vector.broadcast %70 : vector<8x1xf32> to vector<8x32xf32>
    %73 = vector.broadcast %71 : vector<1x32xf32> to vector<8x32xf32>
    %74 = arith.mulf %72, %73 : vector<8x32xf32>
    %75 = arith.addf %69, %74 : vector<8x32xf32>
    %76 = vector.extract_strided_slice %64 {offsets = [0, 2], sizes = [8, 1], strides = [1, 1]} : vector<8x3xf32> to vector<8x1xf32>
    %77 = vector.extract_strided_slice %26 {offsets = [2, 0], sizes = [1, 32], strides = [1, 1]} : vector<3x32xf32> to vector<1x32xf32>
    %78 = vector.broadcast %76 : vector<8x1xf32> to vector<8x32xf32>
    %79 = vector.broadcast %77 : vector<1x32xf32> to vector<8x32xf32>
    %80 = arith.mulf %78, %79 : vector<8x32xf32>
    %81 = arith.addf %75, %80 : vector<8x32xf32>
    %82 = arith.extui %42 : vector<8x1xi1> to vector<8x1xi32>
    %83 = arith.sitofp %82 : vector<8x1xi32> to vector<8x1xf32>
    %cst_26 = arith.constant 1.000000e+00 : f32
    %84 = vector.broadcast %cst_26 : f32 to vector<8x1xf32>
    %85 = arith.subf %84, %83 : vector<8x1xf32>
    %86 = vector.broadcast %85 : vector<8x1xf32> to vector<8x32xf32>
    %87 = arith.mulf %37, %86 : vector<8x32xf32>
    %88 = arith.addf %87, %81 : vector<8x32xf32>
    %c0_27 = arith.constant 0 : index
    %c0_28 = arith.constant 0 : index
    %89 = vector.load %arg8[%c0_27, %c0_28] : memref<8x8xf32, #tpu.memory_space<vmem>>, vector<8x8xf32>
    %c0_29 = arith.constant 0 : index
    %c0_30 = arith.constant 0 : index
    %90 = vector.load %arg9[%c0_29, %c0_30] : memref<8x8xf32, #tpu.memory_space<vmem>>, vector<8x8xf32>
    %c0_31 = arith.constant 0 : index
    %c0_32 = arith.constant 0 : index
    %c0_33 = arith.constant 0 : index
    %91 = vector.load %arg10[%c0_31, %c0_32, %c0_33] : memref<2x1x32xbf16, #tpu.memory_space<vmem>>, vector<1x1x32xbf16>
    %92 = vector.shape_cast %91 : vector<1x1x32xbf16> to vector<1x32xbf16>
    %93 = arith.mulf %88, %88 : vector<8x32xf32>
    %cst_34 = arith.constant dense<0.000000e+00> : vector<8xf32>
    %94 = vector.multi_reduction <add>, %93, %cst_34 [1] : vector<8x32xf32> to vector<8xf32>
    %95 = vector.shape_cast %94 : vector<8xf32> to vector<8x1xf32>
    %cst_35 = arith.constant 3.200000e+01 : f32
    %96 = vector.broadcast %cst_35 : f32 to vector<8x1xf32>
    %97 = arith.divf %95, %96 : vector<8x1xf32>
    %cst_36 = arith.constant 9.99999997E-7 : f32
    %98 = vector.broadcast %cst_36 : f32 to vector<8x1xf32>
    %99 = arith.addf %97, %98 : vector<8x1xf32>
    %100 = math.rsqrt %99 : vector<8x1xf32>
    %101 = vector.broadcast %100 : vector<8x1xf32> to vector<8x32xf32>
    %102 = arith.mulf %88, %101 : vector<8x32xf32>
    %103 = arith.extf %92 : vector<1x32xbf16> to vector<1x32xf32>
    %104 = vector.broadcast %103 : vector<1x32xf32> to vector<8x32xf32>
    %105 = arith.mulf %102, %104 : vector<8x32xf32>
    %106 = arith.truncf %105 : vector<8x32xf32> to vector<8x32xbf16>
    %c0_37 = arith.constant 0 : index
    %c0_38 = arith.constant 0 : index
    %c0_39 = arith.constant 0 : index
    %107 = vector.load %arg11[%c0_37, %c0_38, %c0_39] : memref<2x32x96xbf16, #tpu.memory_space<vmem>>, vector<1x32x96xbf16>
    %108 = vector.shape_cast %107 : vector<1x32x96xbf16> to vector<32x96xbf16>
    %cst_40 = arith.constant dense<0.000000e+00> : vector<8x96xf32>
    %109 = tpu.matmul %106, %108, %cst_40 {dimension_numbers = #tpu.dot_dimension_numbers<[1], [0], [0], [1], [0, 0, 1, 1], [], []>} : vector<8x32xbf16>, vector<32x96xbf16>, vector<8x96xf32> -> vector<8x96xf32>
    %c0_41 = arith.constant 0 : index
    %c0_42 = arith.constant 0 : index
    %c0_43 = arith.constant 0 : index
    %110 = vector.load %arg12[%c0_41, %c0_42, %c0_43] : memref<2x1x96xbf16, #tpu.memory_space<vmem>>, vector<1x1x96xbf16>
    %111 = vector.shape_cast %110 : vector<1x1x96xbf16> to vector<1x96xbf16>
    %112 = arith.extf %111 : vector<1x96xbf16> to vector<1x96xf32>
    %113 = vector.broadcast %112 : vector<1x96xf32> to vector<8x96xf32>
    %114 = arith.addf %109, %113 : vector<8x96xf32>
    %c0_44 = arith.constant 0 : index
    %c0_45 = arith.constant 0 : index
    %c0_46 = arith.constant 0 : index
    %115 = vector.load %arg13[%c0_44, %c0_45, %c0_46] : memref<2x32x32xbf16, #tpu.memory_space<vmem>>, vector<1x32x32xbf16>
    %116 = vector.shape_cast %115 : vector<1x32x32xbf16> to vector<32x32xbf16>
    %cst_47 = arith.constant 0.000000e+00 : f32
    %117 = vector.broadcast %cst_47 : f32 to vector<8x32xf32>
    %118 = vector.extract_strided_slice %114 {offsets = [0, 0], sizes = [8, 8], strides = [1, 1]} : vector<8x96xf32> to vector<8x8xf32>
    %119 = vector.extract_strided_slice %118 {offsets = [0, 4], sizes = [8, 4], strides = [1, 1]} : vector<8x8xf32> to vector<8x4xf32>
    %120 = vector.extract_strided_slice %118 {offsets = [0, 0], sizes = [8, 4], strides = [1, 1]} : vector<8x8xf32> to vector<8x4xf32>
    %121 = tpu.concatenate %119, %120 in 1 : vector<8x4xf32>, vector<8x4xf32> -> vector<8x8xf32>
    %122 = arith.mulf %118, %89 : vector<8x8xf32>
    %123 = arith.mulf %121, %90 : vector<8x8xf32>
    %124 = arith.addf %122, %123 : vector<8x8xf32>
    %125 = vector.extract_strided_slice %114 {offsets = [0, 32], sizes = [8, 8], strides = [1, 1]} : vector<8x96xf32> to vector<8x8xf32>
    %126 = vector.extract_strided_slice %125 {offsets = [0, 4], sizes = [8, 4], strides = [1, 1]} : vector<8x8xf32> to vector<8x4xf32>
    %127 = vector.extract_strided_slice %125 {offsets = [0, 0], sizes = [8, 4], strides = [1, 1]} : vector<8x8xf32> to vector<8x4xf32>
    %128 = tpu.concatenate %126, %127 in 1 : vector<8x4xf32>, vector<8x4xf32> -> vector<8x8xf32>
    %129 = arith.mulf %125, %89 : vector<8x8xf32>
    %130 = arith.mulf %128, %90 : vector<8x8xf32>
    %131 = arith.addf %129, %130 : vector<8x8xf32>
    %132 = vector.extract_strided_slice %114 {offsets = [0, 64], sizes = [8, 8], strides = [1, 1]} : vector<8x96xf32> to vector<8x8xf32>
    %133 = arith.truncf %124 : vector<8x8xf32> to vector<8x8xbf16>
    %134 = arith.truncf %131 : vector<8x8xf32> to vector<8x8xbf16>
    %cst_48 = arith.constant dense<0.000000e+00> : vector<8x8xf32>
    %135 = tpu.matmul %133, %134, %cst_48 {dimension_numbers = #tpu.dot_dimension_numbers<[1], [1], [0], [0], [0, 0, 1, 0], [], []>} : vector<8x8xbf16>, vector<8x8xbf16>, vector<8x8xf32> -> vector<8x8xf32>
    %cst_49 = arith.constant 0.353553385 : f32
    %136 = vector.broadcast %cst_49 : f32 to vector<8x8xf32>
    %137 = arith.mulf %135, %136 : vector<8x8xf32>
    %cst_50 = arith.constant -1.000000e+30 : f32
    %138 = vector.broadcast %cst_50 : f32 to vector<8x8xf32>
    %139 = arith.select %40, %137, %138 : vector<8x8xi1>, vector<8x8xf32>
    %cst_51 = arith.constant dense<0xFF800000> : vector<8xf32>
    %140 = vector.multi_reduction <maximumf>, %139, %cst_51 [1] : vector<8x8xf32> to vector<8xf32>
    %141 = vector.shape_cast %140 : vector<8xf32> to vector<8x1xf32>
    %142 = vector.broadcast %141 : vector<8x1xf32> to vector<8x8xf32>
    %143 = arith.subf %139, %142 : vector<8x8xf32>
    %144 = math.exp %143 : vector<8x8xf32>
    %cst_52 = arith.constant dense<0.000000e+00> : vector<8xf32>
    %145 = vector.multi_reduction <add>, %144, %cst_52 [1] : vector<8x8xf32> to vector<8xf32>
    %146 = vector.shape_cast %145 : vector<8xf32> to vector<8x1xf32>
    %147 = tpu.reciprocal %146 {approx = true} : vector<8x1xf32> -> vector<8x1xf32>
    %148 = vector.broadcast %147 : vector<8x1xf32> to vector<8x8xf32>
    %149 = arith.mulf %144, %148 : vector<8x8xf32>
    %150 = arith.truncf %149 : vector<8x8xf32> to vector<8x8xbf16>
    %151 = arith.truncf %132 : vector<8x8xf32> to vector<8x8xbf16>
    %cst_53 = arith.constant dense<0.000000e+00> : vector<8x8xf32>
    %152 = tpu.matmul %150, %151, %cst_53 {dimension_numbers = #tpu.dot_dimension_numbers<[1], [0], [0], [1], [0, 0, 1, 1], [], []>} : vector<8x8xbf16>, vector<8x8xbf16>, vector<8x8xf32> -> vector<8x8xf32>
    %153 = arith.truncf %152 : vector<8x8xf32> to vector<8x8xbf16>
    %154 = vector.extract_strided_slice %116 {offsets = [0, 0], sizes = [8, 32], strides = [1, 1]} : vector<32x32xbf16> to vector<8x32xbf16>
    %cst_54 = arith.constant dense<0.000000e+00> : vector<8x32xf32>
    %155 = tpu.matmul %153, %154, %cst_54 {dimension_numbers = #tpu.dot_dimension_numbers<[1], [0], [0], [1], [0, 0, 1, 1], [], []>} : vector<8x8xbf16>, vector<8x32xbf16>, vector<8x32xf32> -> vector<8x32xf32>
    %156 = arith.addf %117, %155 : vector<8x32xf32>
    %157 = vector.extract_strided_slice %114 {offsets = [0, 8], sizes = [8, 8], strides = [1, 1]} : vector<8x96xf32> to vector<8x8xf32>
    %158 = vector.extract_strided_slice %157 {offsets = [0, 4], sizes = [8, 4], strides = [1, 1]} : vector<8x8xf32> to vector<8x4xf32>
    %159 = vector.extract_strided_slice %157 {offsets = [0, 0], sizes = [8, 4], strides = [1, 1]} : vector<8x8xf32> to vector<8x4xf32>
    %160 = tpu.concatenate %158, %159 in 1 : vector<8x4xf32>, vector<8x4xf32> -> vector<8x8xf32>
    %161 = arith.mulf %157, %89 : vector<8x8xf32>
    %162 = arith.mulf %160, %90 : vector<8x8xf32>
    %163 = arith.addf %161, %162 : vector<8x8xf32>
    %164 = vector.extract_strided_slice %114 {offsets = [0, 40], sizes = [8, 8], strides = [1, 1]} : vector<8x96xf32> to vector<8x8xf32>
    %165 = vector.extract_strided_slice %164 {offsets = [0, 4], sizes = [8, 4], strides = [1, 1]} : vector<8x8xf32> to vector<8x4xf32>
    %166 = vector.extract_strided_slice %164 {offsets = [0, 0], sizes = [8, 4], strides = [1, 1]} : vector<8x8xf32> to vector<8x4xf32>
    %167 = tpu.concatenate %165, %166 in 1 : vector<8x4xf32>, vector<8x4xf32> -> vector<8x8xf32>
    %168 = arith.mulf %164, %89 : vector<8x8xf32>
    %169 = arith.mulf %167, %90 : vector<8x8xf32>
    %170 = arith.addf %168, %169 : vector<8x8xf32>
    %171 = vector.extract_strided_slice %114 {offsets = [0, 72], sizes = [8, 8], strides = [1, 1]} : vector<8x96xf32> to vector<8x8xf32>
    %172 = arith.truncf %163 : vector<8x8xf32> to vector<8x8xbf16>
    %173 = arith.truncf %170 : vector<8x8xf32> to vector<8x8xbf16>
    %cst_55 = arith.constant dense<0.000000e+00> : vector<8x8xf32>
    %174 = tpu.matmul %172, %173, %cst_55 {dimension_numbers = #tpu.dot_dimension_numbers<[1], [1], [0], [0], [0, 0, 1, 0], [], []>} : vector<8x8xbf16>, vector<8x8xbf16>, vector<8x8xf32> -> vector<8x8xf32>
    %cst_56 = arith.constant 0.353553385 : f32
    %175 = vector.broadcast %cst_56 : f32 to vector<8x8xf32>
    %176 = arith.mulf %174, %175 : vector<8x8xf32>
    %cst_57 = arith.constant -1.000000e+30 : f32
    %177 = vector.broadcast %cst_57 : f32 to vector<8x8xf32>
    %178 = arith.select %40, %176, %177 : vector<8x8xi1>, vector<8x8xf32>
    %cst_58 = arith.constant dense<0xFF800000> : vector<8xf32>
    %179 = vector.multi_reduction <maximumf>, %178, %cst_58 [1] : vector<8x8xf32> to vector<8xf32>
    %180 = vector.shape_cast %179 : vector<8xf32> to vector<8x1xf32>
    %181 = vector.broadcast %180 : vector<8x1xf32> to vector<8x8xf32>
    %182 = arith.subf %178, %181 : vector<8x8xf32>
    %183 = math.exp %182 : vector<8x8xf32>
    %cst_59 = arith.constant dense<0.000000e+00> : vector<8xf32>
    %184 = vector.multi_reduction <add>, %183, %cst_59 [1] : vector<8x8xf32> to vector<8xf32>
    %185 = vector.shape_cast %184 : vector<8xf32> to vector<8x1xf32>
    %186 = tpu.reciprocal %185 {approx = true} : vector<8x1xf32> -> vector<8x1xf32>
    %187 = vector.broadcast %186 : vector<8x1xf32> to vector<8x8xf32>
    %188 = arith.mulf %183, %187 : vector<8x8xf32>
    %189 = arith.truncf %188 : vector<8x8xf32> to vector<8x8xbf16>
    %190 = arith.truncf %171 : vector<8x8xf32> to vector<8x8xbf16>
    %cst_60 = arith.constant dense<0.000000e+00> : vector<8x8xf32>
    %191 = tpu.matmul %189, %190, %cst_60 {dimension_numbers = #tpu.dot_dimension_numbers<[1], [0], [0], [1], [0, 0, 1, 1], [], []>} : vector<8x8xbf16>, vector<8x8xbf16>, vector<8x8xf32> -> vector<8x8xf32>
    %192 = arith.truncf %191 : vector<8x8xf32> to vector<8x8xbf16>
    %193 = vector.extract_strided_slice %116 {offsets = [8, 0], sizes = [8, 32], strides = [1, 1]} : vector<32x32xbf16> to vector<8x32xbf16>
    %cst_61 = arith.constant dense<0.000000e+00> : vector<8x32xf32>
    %194 = tpu.matmul %192, %193, %cst_61 {dimension_numbers = #tpu.dot_dimension_numbers<[1], [0], [0], [1], [0, 0, 1, 1], [], []>} : vector<8x8xbf16>, vector<8x32xbf16>, vector<8x32xf32> -> vector<8x32xf32>
    %195 = arith.addf %156, %194 : vector<8x32xf32>
    %196 = vector.extract_strided_slice %114 {offsets = [0, 16], sizes = [8, 8], strides = [1, 1]} : vector<8x96xf32> to vector<8x8xf32>
    %197 = vector.extract_strided_slice %196 {offsets = [0, 4], sizes = [8, 4], strides = [1, 1]} : vector<8x8xf32> to vector<8x4xf32>
    %198 = vector.extract_strided_slice %196 {offsets = [0, 0], sizes = [8, 4], strides = [1, 1]} : vector<8x8xf32> to vector<8x4xf32>
    %199 = tpu.concatenate %197, %198 in 1 : vector<8x4xf32>, vector<8x4xf32> -> vector<8x8xf32>
    %200 = arith.mulf %196, %89 : vector<8x8xf32>
    %201 = arith.mulf %199, %90 : vector<8x8xf32>
    %202 = arith.addf %200, %201 : vector<8x8xf32>
    %203 = vector.extract_strided_slice %114 {offsets = [0, 48], sizes = [8, 8], strides = [1, 1]} : vector<8x96xf32> to vector<8x8xf32>
    %204 = vector.extract_strided_slice %203 {offsets = [0, 4], sizes = [8, 4], strides = [1, 1]} : vector<8x8xf32> to vector<8x4xf32>
    %205 = vector.extract_strided_slice %203 {offsets = [0, 0], sizes = [8, 4], strides = [1, 1]} : vector<8x8xf32> to vector<8x4xf32>
    %206 = tpu.concatenate %204, %205 in 1 : vector<8x4xf32>, vector<8x4xf32> -> vector<8x8xf32>
    %207 = arith.mulf %203, %89 : vector<8x8xf32>
    %208 = arith.mulf %206, %90 : vector<8x8xf32>
    %209 = arith.addf %207, %208 : vector<8x8xf32>
    %210 = vector.extract_strided_slice %114 {offsets = [0, 80], sizes = [8, 8], strides = [1, 1]} : vector<8x96xf32> to vector<8x8xf32>
    %211 = arith.truncf %202 : vector<8x8xf32> to vector<8x8xbf16>
    %212 = arith.truncf %209 : vector<8x8xf32> to vector<8x8xbf16>
    %cst_62 = arith.constant dense<0.000000e+00> : vector<8x8xf32>
    %213 = tpu.matmul %211, %212, %cst_62 {dimension_numbers = #tpu.dot_dimension_numbers<[1], [1], [0], [0], [0, 0, 1, 0], [], []>} : vector<8x8xbf16>, vector<8x8xbf16>, vector<8x8xf32> -> vector<8x8xf32>
    %cst_63 = arith.constant 0.353553385 : f32
    %214 = vector.broadcast %cst_63 : f32 to vector<8x8xf32>
    %215 = arith.mulf %213, %214 : vector<8x8xf32>
    %cst_64 = arith.constant -1.000000e+30 : f32
    %216 = vector.broadcast %cst_64 : f32 to vector<8x8xf32>
    %217 = arith.select %40, %215, %216 : vector<8x8xi1>, vector<8x8xf32>
    %cst_65 = arith.constant dense<0xFF800000> : vector<8xf32>
    %218 = vector.multi_reduction <maximumf>, %217, %cst_65 [1] : vector<8x8xf32> to vector<8xf32>
    %219 = vector.shape_cast %218 : vector<8xf32> to vector<8x1xf32>
    %220 = vector.broadcast %219 : vector<8x1xf32> to vector<8x8xf32>
    %221 = arith.subf %217, %220 : vector<8x8xf32>
    %222 = math.exp %221 : vector<8x8xf32>
    %cst_66 = arith.constant dense<0.000000e+00> : vector<8xf32>
    %223 = vector.multi_reduction <add>, %222, %cst_66 [1] : vector<8x8xf32> to vector<8xf32>
    %224 = vector.shape_cast %223 : vector<8xf32> to vector<8x1xf32>
    %225 = tpu.reciprocal %224 {approx = true} : vector<8x1xf32> -> vector<8x1xf32>
    %226 = vector.broadcast %225 : vector<8x1xf32> to vector<8x8xf32>
    %227 = arith.mulf %222, %226 : vector<8x8xf32>
    %228 = arith.truncf %227 : vector<8x8xf32> to vector<8x8xbf16>
    %229 = arith.truncf %210 : vector<8x8xf32> to vector<8x8xbf16>
    %cst_67 = arith.constant dense<0.000000e+00> : vector<8x8xf32>
    %230 = tpu.matmul %228, %229, %cst_67 {dimension_numbers = #tpu.dot_dimension_numbers<[1], [0], [0], [1], [0, 0, 1, 1], [], []>} : vector<8x8xbf16>, vector<8x8xbf16>, vector<8x8xf32> -> vector<8x8xf32>
    %231 = arith.truncf %230 : vector<8x8xf32> to vector<8x8xbf16>
    %232 = vector.extract_strided_slice %116 {offsets = [16, 0], sizes = [8, 32], strides = [1, 1]} : vector<32x32xbf16> to vector<8x32xbf16>
    %cst_68 = arith.constant dense<0.000000e+00> : vector<8x32xf32>
    %233 = tpu.matmul %231, %232, %cst_68 {dimension_numbers = #tpu.dot_dimension_numbers<[1], [0], [0], [1], [0, 0, 1, 1], [], []>} : vector<8x8xbf16>, vector<8x32xbf16>, vector<8x32xf32> -> vector<8x32xf32>
    %234 = arith.addf %195, %233 : vector<8x32xf32>
    %235 = vector.extract_strided_slice %114 {offsets = [0, 24], sizes = [8, 8], strides = [1, 1]} : vector<8x96xf32> to vector<8x8xf32>
    %236 = vector.extract_strided_slice %235 {offsets = [0, 4], sizes = [8, 4], strides = [1, 1]} : vector<8x8xf32> to vector<8x4xf32>
    %237 = vector.extract_strided_slice %235 {offsets = [0, 0], sizes = [8, 4], strides = [1, 1]} : vector<8x8xf32> to vector<8x4xf32>
    %238 = tpu.concatenate %236, %237 in 1 : vector<8x4xf32>, vector<8x4xf32> -> vector<8x8xf32>
    %239 = arith.mulf %235, %89 : vector<8x8xf32>
    %240 = arith.mulf %238, %90 : vector<8x8xf32>
    %241 = arith.addf %239, %240 : vector<8x8xf32>
    %242 = vector.extract_strided_slice %114 {offsets = [0, 56], sizes = [8, 8], strides = [1, 1]} : vector<8x96xf32> to vector<8x8xf32>
    %243 = vector.extract_strided_slice %242 {offsets = [0, 4], sizes = [8, 4], strides = [1, 1]} : vector<8x8xf32> to vector<8x4xf32>
    %244 = vector.extract_strided_slice %242 {offsets = [0, 0], sizes = [8, 4], strides = [1, 1]} : vector<8x8xf32> to vector<8x4xf32>
    %245 = tpu.concatenate %243, %244 in 1 : vector<8x4xf32>, vector<8x4xf32> -> vector<8x8xf32>
    %246 = arith.mulf %242, %89 : vector<8x8xf32>
    %247 = arith.mulf %245, %90 : vector<8x8xf32>
    %248 = arith.addf %246, %247 : vector<8x8xf32>
    %249 = vector.extract_strided_slice %114 {offsets = [0, 88], sizes = [8, 8], strides = [1, 1]} : vector<8x96xf32> to vector<8x8xf32>
    %250 = arith.truncf %241 : vector<8x8xf32> to vector<8x8xbf16>
    %251 = arith.truncf %248 : vector<8x8xf32> to vector<8x8xbf16>
    %cst_69 = arith.constant dense<0.000000e+00> : vector<8x8xf32>
    %252 = tpu.matmul %250, %251, %cst_69 {dimension_numbers = #tpu.dot_dimension_numbers<[1], [1], [0], [0], [0, 0, 1, 0], [], []>} : vector<8x8xbf16>, vector<8x8xbf16>, vector<8x8xf32> -> vector<8x8xf32>
    %cst_70 = arith.constant 0.353553385 : f32
    %253 = vector.broadcast %cst_70 : f32 to vector<8x8xf32>
    %254 = arith.mulf %252, %253 : vector<8x8xf32>
    %cst_71 = arith.constant -1.000000e+30 : f32
    %255 = vector.broadcast %cst_71 : f32 to vector<8x8xf32>
    %256 = arith.select %40, %254, %255 : vector<8x8xi1>, vector<8x8xf32>
    %cst_72 = arith.constant dense<0xFF800000> : vector<8xf32>
    %257 = vector.multi_reduction <maximumf>, %256, %cst_72 [1] : vector<8x8xf32> to vector<8xf32>
    %258 = vector.shape_cast %257 : vector<8xf32> to vector<8x1xf32>
    %259 = vector.broadcast %258 : vector<8x1xf32> to vector<8x8xf32>
    %260 = arith.subf %256, %259 : vector<8x8xf32>
    %261 = math.exp %260 : vector<8x8xf32>
    %cst_73 = arith.constant dense<0.000000e+00> : vector<8xf32>
    %262 = vector.multi_reduction <add>, %261, %cst_73 [1] : vector<8x8xf32> to vector<8xf32>
    %263 = vector.shape_cast %262 : vector<8xf32> to vector<8x1xf32>
    %264 = tpu.reciprocal %263 {approx = true} : vector<8x1xf32> -> vector<8x1xf32>
    %265 = vector.broadcast %264 : vector<8x1xf32> to vector<8x8xf32>
    %266 = arith.mulf %261, %265 : vector<8x8xf32>
    %267 = arith.truncf %266 : vector<8x8xf32> to vector<8x8xbf16>
    %268 = arith.truncf %249 : vector<8x8xf32> to vector<8x8xbf16>
    %cst_74 = arith.constant dense<0.000000e+00> : vector<8x8xf32>
    %269 = tpu.matmul %267, %268, %cst_74 {dimension_numbers = #tpu.dot_dimension_numbers<[1], [0], [0], [1], [0, 0, 1, 1], [], []>} : vector<8x8xbf16>, vector<8x8xbf16>, vector<8x8xf32> -> vector<8x8xf32>
    %270 = arith.truncf %269 : vector<8x8xf32> to vector<8x8xbf16>
    %271 = vector.extract_strided_slice %116 {offsets = [24, 0], sizes = [8, 32], strides = [1, 1]} : vector<32x32xbf16> to vector<8x32xbf16>
    %cst_75 = arith.constant dense<0.000000e+00> : vector<8x32xf32>
    %272 = tpu.matmul %270, %271, %cst_75 {dimension_numbers = #tpu.dot_dimension_numbers<[1], [0], [0], [1], [0, 0, 1, 1], [], []>} : vector<8x8xbf16>, vector<8x32xbf16>, vector<8x32xf32> -> vector<8x32xf32>
    %273 = arith.addf %234, %272 : vector<8x32xf32>
    %274 = arith.addf %88, %273 : vector<8x32xf32>
    %c0_76 = arith.constant 0 : index
    %c0_77 = arith.constant 0 : index
    %c0_78 = arith.constant 0 : index
    %275 = vector.load %arg14[%c0_76, %c0_77, %c0_78] : memref<2x1x32xbf16, #tpu.memory_space<vmem>>, vector<1x1x32xbf16>
    %276 = vector.shape_cast %275 : vector<1x1x32xbf16> to vector<1x32xbf16>
    %277 = arith.mulf %274, %274 : vector<8x32xf32>
    %cst_79 = arith.constant dense<0.000000e+00> : vector<8xf32>
    %278 = vector.multi_reduction <add>, %277, %cst_79 [1] : vector<8x32xf32> to vector<8xf32>
    %279 = vector.shape_cast %278 : vector<8xf32> to vector<8x1xf32>
    %cst_80 = arith.constant 3.200000e+01 : f32
    %280 = vector.broadcast %cst_80 : f32 to vector<8x1xf32>
    %281 = arith.divf %279, %280 : vector<8x1xf32>
    %cst_81 = arith.constant 9.99999997E-7 : f32
    %282 = vector.broadcast %cst_81 : f32 to vector<8x1xf32>
    %283 = arith.addf %281, %282 : vector<8x1xf32>
    %284 = math.rsqrt %283 : vector<8x1xf32>
    %285 = vector.broadcast %284 : vector<8x1xf32> to vector<8x32xf32>
    %286 = arith.mulf %274, %285 : vector<8x32xf32>
    %287 = arith.extf %276 : vector<1x32xbf16> to vector<1x32xf32>
    %288 = vector.broadcast %287 : vector<1x32xf32> to vector<8x32xf32>
    %289 = arith.mulf %286, %288 : vector<8x32xf32>
    %290 = arith.truncf %289 : vector<8x32xf32> to vector<8x32xbf16>
    %c0_82 = arith.constant 0 : index
    %c0_83 = arith.constant 0 : index
    %c0_84 = arith.constant 0 : index
    %291 = vector.load %arg15[%c0_82, %c0_83, %c0_84] : memref<2x32x128xbf16, #tpu.memory_space<vmem>>, vector<1x32x128xbf16>
    %292 = vector.shape_cast %291 : vector<1x32x128xbf16> to vector<32x128xbf16>
    %cst_85 = arith.constant dense<0.000000e+00> : vector<8x128xf32>
    %293 = tpu.matmul %290, %292, %cst_85 {dimension_numbers = #tpu.dot_dimension_numbers<[1], [0], [0], [1], [0, 0, 1, 1], [], []>} : vector<8x32xbf16>, vector<32x128xbf16>, vector<8x128xf32> -> vector<8x128xf32>
    %294 = vector.extract_strided_slice %293 {offsets = [0, 0], sizes = [8, 64], strides = [1, 1]} : vector<8x128xf32> to vector<8x64xf32>
    %295 = vector.extract_strided_slice %293 {offsets = [0, 64], sizes = [8, 64], strides = [1, 1]} : vector<8x128xf32> to vector<8x64xf32>
    %296 = arith.negf %294 : vector<8x64xf32>
    %297 = math.exp %296 : vector<8x64xf32>
    %cst_86 = arith.constant 1.000000e+00 : f32
    %298 = vector.broadcast %cst_86 : f32 to vector<8x64xf32>
    %299 = arith.addf %298, %297 : vector<8x64xf32>
    %300 = arith.divf %298, %299 : vector<8x64xf32>
    %301 = arith.mulf %294, %300 : vector<8x64xf32>
    %302 = arith.mulf %301, %295 : vector<8x64xf32>
    %303 = arith.truncf %302 : vector<8x64xf32> to vector<8x64xbf16>
    %c0_87 = arith.constant 0 : index
    %c0_88 = arith.constant 0 : index
    %c0_89 = arith.constant 0 : index
    %304 = vector.load %arg16[%c0_87, %c0_88, %c0_89] : memref<2x64x32xbf16, #tpu.memory_space<vmem>>, vector<1x64x32xbf16>
    %305 = vector.shape_cast %304 : vector<1x64x32xbf16> to vector<64x32xbf16>
    %cst_90 = arith.constant dense<0.000000e+00> : vector<8x32xf32>
    %306 = tpu.matmul %303, %305, %cst_90 {dimension_numbers = #tpu.dot_dimension_numbers<[1], [0], [0], [1], [0, 0, 1, 1], [], []>} : vector<8x64xbf16>, vector<64x32xbf16>, vector<8x32xf32> -> vector<8x32xf32>
    %307 = arith.addf %274, %306 : vector<8x32xf32>
    %c1 = arith.constant 1 : index
    %c0_91 = arith.constant 0 : index
    %c0_92 = arith.constant 0 : index
    %308 = vector.load %arg10[%c1, %c0_91, %c0_92] : memref<2x1x32xbf16, #tpu.memory_space<vmem>>, vector<1x1x32xbf16>
    %309 = vector.shape_cast %308 : vector<1x1x32xbf16> to vector<1x32xbf16>
    %310 = arith.mulf %307, %307 : vector<8x32xf32>
    %cst_93 = arith.constant dense<0.000000e+00> : vector<8xf32>
    %311 = vector.multi_reduction <add>, %310, %cst_93 [1] : vector<8x32xf32> to vector<8xf32>
    %312 = vector.shape_cast %311 : vector<8xf32> to vector<8x1xf32>
    %cst_94 = arith.constant 3.200000e+01 : f32
    %313 = vector.broadcast %cst_94 : f32 to vector<8x1xf32>
    %314 = arith.divf %312, %313 : vector<8x1xf32>
    %cst_95 = arith.constant 9.99999997E-7 : f32
    %315 = vector.broadcast %cst_95 : f32 to vector<8x1xf32>
    %316 = arith.addf %314, %315 : vector<8x1xf32>
    %317 = math.rsqrt %316 : vector<8x1xf32>
    %318 = vector.broadcast %317 : vector<8x1xf32> to vector<8x32xf32>
    %319 = arith.mulf %307, %318 : vector<8x32xf32>
    %320 = arith.extf %309 : vector<1x32xbf16> to vector<1x32xf32>
    %321 = vector.broadcast %320 : vector<1x32xf32> to vector<8x32xf32>
    %322 = arith.mulf %319, %321 : vector<8x32xf32>
    %323 = arith.truncf %322 : vector<8x32xf32> to vector<8x32xbf16>
    %c1_96 = arith.constant 1 : index
    %c0_97 = arith.constant 0 : index
    %c0_98 = arith.constant 0 : index
    %324 = vector.load %arg11[%c1_96, %c0_97, %c0_98] : memref<2x32x96xbf16, #tpu.memory_space<vmem>>, vector<1x32x96xbf16>
    %325 = vector.shape_cast %324 : vector<1x32x96xbf16> to vector<32x96xbf16>
    %cst_99 = arith.constant dense<0.000000e+00> : vector<8x96xf32>
    %326 = tpu.matmul %323, %325, %cst_99 {dimension_numbers = #tpu.dot_dimension_numbers<[1], [0], [0], [1], [0, 0, 1, 1], [], []>} : vector<8x32xbf16>, vector<32x96xbf16>, vector<8x96xf32> -> vector<8x96xf32>
    %c1_100 = arith.constant 1 : index
    %c0_101 = arith.constant 0 : index
    %c0_102 = arith.constant 0 : index
    %327 = vector.load %arg12[%c1_100, %c0_101, %c0_102] : memref<2x1x96xbf16, #tpu.memory_space<vmem>>, vector<1x1x96xbf16>
    %328 = vector.shape_cast %327 : vector<1x1x96xbf16> to vector<1x96xbf16>
    %329 = arith.extf %328 : vector<1x96xbf16> to vector<1x96xf32>
    %330 = vector.broadcast %329 : vector<1x96xf32> to vector<8x96xf32>
    %331 = arith.addf %326, %330 : vector<8x96xf32>
    %c1_103 = arith.constant 1 : index
    %c0_104 = arith.constant 0 : index
    %c0_105 = arith.constant 0 : index
    %332 = vector.load %arg13[%c1_103, %c0_104, %c0_105] : memref<2x32x32xbf16, #tpu.memory_space<vmem>>, vector<1x32x32xbf16>
    %333 = vector.shape_cast %332 : vector<1x32x32xbf16> to vector<32x32xbf16>
    %cst_106 = arith.constant 0.000000e+00 : f32
    %334 = vector.broadcast %cst_106 : f32 to vector<8x32xf32>
    %335 = vector.extract_strided_slice %331 {offsets = [0, 0], sizes = [8, 8], strides = [1, 1]} : vector<8x96xf32> to vector<8x8xf32>
    %336 = vector.extract_strided_slice %335 {offsets = [0, 4], sizes = [8, 4], strides = [1, 1]} : vector<8x8xf32> to vector<8x4xf32>
    %337 = vector.extract_strided_slice %335 {offsets = [0, 0], sizes = [8, 4], strides = [1, 1]} : vector<8x8xf32> to vector<8x4xf32>
    %338 = tpu.concatenate %336, %337 in 1 : vector<8x4xf32>, vector<8x4xf32> -> vector<8x8xf32>
    %339 = arith.mulf %335, %89 : vector<8x8xf32>
    %340 = arith.mulf %338, %90 : vector<8x8xf32>
    %341 = arith.addf %339, %340 : vector<8x8xf32>
    %342 = vector.extract_strided_slice %331 {offsets = [0, 32], sizes = [8, 8], strides = [1, 1]} : vector<8x96xf32> to vector<8x8xf32>
    %343 = vector.extract_strided_slice %342 {offsets = [0, 4], sizes = [8, 4], strides = [1, 1]} : vector<8x8xf32> to vector<8x4xf32>
    %344 = vector.extract_strided_slice %342 {offsets = [0, 0], sizes = [8, 4], strides = [1, 1]} : vector<8x8xf32> to vector<8x4xf32>
    %345 = tpu.concatenate %343, %344 in 1 : vector<8x4xf32>, vector<8x4xf32> -> vector<8x8xf32>
    %346 = arith.mulf %342, %89 : vector<8x8xf32>
    %347 = arith.mulf %345, %90 : vector<8x8xf32>
    %348 = arith.addf %346, %347 : vector<8x8xf32>
    %349 = vector.extract_strided_slice %331 {offsets = [0, 64], sizes = [8, 8], strides = [1, 1]} : vector<8x96xf32> to vector<8x8xf32>
    %350 = arith.truncf %341 : vector<8x8xf32> to vector<8x8xbf16>
    %351 = arith.truncf %348 : vector<8x8xf32> to vector<8x8xbf16>
    %cst_107 = arith.constant dense<0.000000e+00> : vector<8x8xf32>
    %352 = tpu.matmul %350, %351, %cst_107 {dimension_numbers = #tpu.dot_dimension_numbers<[1], [1], [0], [0], [0, 0, 1, 0], [], []>} : vector<8x8xbf16>, vector<8x8xbf16>, vector<8x8xf32> -> vector<8x8xf32>
    %cst_108 = arith.constant 0.353553385 : f32
    %353 = vector.broadcast %cst_108 : f32 to vector<8x8xf32>
    %354 = arith.mulf %352, %353 : vector<8x8xf32>
    %cst_109 = arith.constant -1.000000e+30 : f32
    %355 = vector.broadcast %cst_109 : f32 to vector<8x8xf32>
    %356 = arith.select %40, %354, %355 : vector<8x8xi1>, vector<8x8xf32>
    %cst_110 = arith.constant dense<0xFF800000> : vector<8xf32>
    %357 = vector.multi_reduction <maximumf>, %356, %cst_110 [1] : vector<8x8xf32> to vector<8xf32>
    %358 = vector.shape_cast %357 : vector<8xf32> to vector<8x1xf32>
    %359 = vector.broadcast %358 : vector<8x1xf32> to vector<8x8xf32>
    %360 = arith.subf %356, %359 : vector<8x8xf32>
    %361 = math.exp %360 : vector<8x8xf32>
    %cst_111 = arith.constant dense<0.000000e+00> : vector<8xf32>
    %362 = vector.multi_reduction <add>, %361, %cst_111 [1] : vector<8x8xf32> to vector<8xf32>
    %363 = vector.shape_cast %362 : vector<8xf32> to vector<8x1xf32>
    %364 = tpu.reciprocal %363 {approx = true} : vector<8x1xf32> -> vector<8x1xf32>
    %365 = vector.broadcast %364 : vector<8x1xf32> to vector<8x8xf32>
    %366 = arith.mulf %361, %365 : vector<8x8xf32>
    %367 = arith.truncf %366 : vector<8x8xf32> to vector<8x8xbf16>
    %368 = arith.truncf %349 : vector<8x8xf32> to vector<8x8xbf16>
    %cst_112 = arith.constant dense<0.000000e+00> : vector<8x8xf32>
    %369 = tpu.matmul %367, %368, %cst_112 {dimension_numbers = #tpu.dot_dimension_numbers<[1], [0], [0], [1], [0, 0, 1, 1], [], []>} : vector<8x8xbf16>, vector<8x8xbf16>, vector<8x8xf32> -> vector<8x8xf32>
    %370 = arith.truncf %369 : vector<8x8xf32> to vector<8x8xbf16>
    %371 = vector.extract_strided_slice %333 {offsets = [0, 0], sizes = [8, 32], strides = [1, 1]} : vector<32x32xbf16> to vector<8x32xbf16>
    %cst_113 = arith.constant dense<0.000000e+00> : vector<8x32xf32>
    %372 = tpu.matmul %370, %371, %cst_113 {dimension_numbers = #tpu.dot_dimension_numbers<[1], [0], [0], [1], [0, 0, 1, 1], [], []>} : vector<8x8xbf16>, vector<8x32xbf16>, vector<8x32xf32> -> vector<8x32xf32>
    %373 = arith.addf %334, %372 : vector<8x32xf32>
    %374 = vector.extract_strided_slice %331 {offsets = [0, 8], sizes = [8, 8], strides = [1, 1]} : vector<8x96xf32> to vector<8x8xf32>
    %375 = vector.extract_strided_slice %374 {offsets = [0, 4], sizes = [8, 4], strides = [1, 1]} : vector<8x8xf32> to vector<8x4xf32>
    %376 = vector.extract_strided_slice %374 {offsets = [0, 0], sizes = [8, 4], strides = [1, 1]} : vector<8x8xf32> to vector<8x4xf32>
    %377 = tpu.concatenate %375, %376 in 1 : vector<8x4xf32>, vector<8x4xf32> -> vector<8x8xf32>
    %378 = arith.mulf %374, %89 : vector<8x8xf32>
    %379 = arith.mulf %377, %90 : vector<8x8xf32>
    %380 = arith.addf %378, %379 : vector<8x8xf32>
    %381 = vector.extract_strided_slice %331 {offsets = [0, 40], sizes = [8, 8], strides = [1, 1]} : vector<8x96xf32> to vector<8x8xf32>
    %382 = vector.extract_strided_slice %381 {offsets = [0, 4], sizes = [8, 4], strides = [1, 1]} : vector<8x8xf32> to vector<8x4xf32>
    %383 = vector.extract_strided_slice %381 {offsets = [0, 0], sizes = [8, 4], strides = [1, 1]} : vector<8x8xf32> to vector<8x4xf32>
    %384 = tpu.concatenate %382, %383 in 1 : vector<8x4xf32>, vector<8x4xf32> -> vector<8x8xf32>
    %385 = arith.mulf %381, %89 : vector<8x8xf32>
    %386 = arith.mulf %384, %90 : vector<8x8xf32>
    %387 = arith.addf %385, %386 : vector<8x8xf32>
    %388 = vector.extract_strided_slice %331 {offsets = [0, 72], sizes = [8, 8], strides = [1, 1]} : vector<8x96xf32> to vector<8x8xf32>
    %389 = arith.truncf %380 : vector<8x8xf32> to vector<8x8xbf16>
    %390 = arith.truncf %387 : vector<8x8xf32> to vector<8x8xbf16>
    %cst_114 = arith.constant dense<0.000000e+00> : vector<8x8xf32>
    %391 = tpu.matmul %389, %390, %cst_114 {dimension_numbers = #tpu.dot_dimension_numbers<[1], [1], [0], [0], [0, 0, 1, 0], [], []>} : vector<8x8xbf16>, vector<8x8xbf16>, vector<8x8xf32> -> vector<8x8xf32>
    %cst_115 = arith.constant 0.353553385 : f32
    %392 = vector.broadcast %cst_115 : f32 to vector<8x8xf32>
    %393 = arith.mulf %391, %392 : vector<8x8xf32>
    %cst_116 = arith.constant -1.000000e+30 : f32
    %394 = vector.broadcast %cst_116 : f32 to vector<8x8xf32>
    %395 = arith.select %40, %393, %394 : vector<8x8xi1>, vector<8x8xf32>
    %cst_117 = arith.constant dense<0xFF800000> : vector<8xf32>
    %396 = vector.multi_reduction <maximumf>, %395, %cst_117 [1] : vector<8x8xf32> to vector<8xf32>
    %397 = vector.shape_cast %396 : vector<8xf32> to vector<8x1xf32>
    %398 = vector.broadcast %397 : vector<8x1xf32> to vector<8x8xf32>
    %399 = arith.subf %395, %398 : vector<8x8xf32>
    %400 = math.exp %399 : vector<8x8xf32>
    %cst_118 = arith.constant dense<0.000000e+00> : vector<8xf32>
    %401 = vector.multi_reduction <add>, %400, %cst_118 [1] : vector<8x8xf32> to vector<8xf32>
    %402 = vector.shape_cast %401 : vector<8xf32> to vector<8x1xf32>
    %403 = tpu.reciprocal %402 {approx = true} : vector<8x1xf32> -> vector<8x1xf32>
    %404 = vector.broadcast %403 : vector<8x1xf32> to vector<8x8xf32>
    %405 = arith.mulf %400, %404 : vector<8x8xf32>
    %406 = arith.truncf %405 : vector<8x8xf32> to vector<8x8xbf16>
    %407 = arith.truncf %388 : vector<8x8xf32> to vector<8x8xbf16>
    %cst_119 = arith.constant dense<0.000000e+00> : vector<8x8xf32>
    %408 = tpu.matmul %406, %407, %cst_119 {dimension_numbers = #tpu.dot_dimension_numbers<[1], [0], [0], [1], [0, 0, 1, 1], [], []>} : vector<8x8xbf16>, vector<8x8xbf16>, vector<8x8xf32> -> vector<8x8xf32>
    %409 = arith.truncf %408 : vector<8x8xf32> to vector<8x8xbf16>
    %410 = vector.extract_strided_slice %333 {offsets = [8, 0], sizes = [8, 32], strides = [1, 1]} : vector<32x32xbf16> to vector<8x32xbf16>
    %cst_120 = arith.constant dense<0.000000e+00> : vector<8x32xf32>
    %411 = tpu.matmul %409, %410, %cst_120 {dimension_numbers = #tpu.dot_dimension_numbers<[1], [0], [0], [1], [0, 0, 1, 1], [], []>} : vector<8x8xbf16>, vector<8x32xbf16>, vector<8x32xf32> -> vector<8x32xf32>
    %412 = arith.addf %373, %411 : vector<8x32xf32>
    %413 = vector.extract_strided_slice %331 {offsets = [0, 16], sizes = [8, 8], strides = [1, 1]} : vector<8x96xf32> to vector<8x8xf32>
    %414 = vector.extract_strided_slice %413 {offsets = [0, 4], sizes = [8, 4], strides = [1, 1]} : vector<8x8xf32> to vector<8x4xf32>
    %415 = vector.extract_strided_slice %413 {offsets = [0, 0], sizes = [8, 4], strides = [1, 1]} : vector<8x8xf32> to vector<8x4xf32>
    %416 = tpu.concatenate %414, %415 in 1 : vector<8x4xf32>, vector<8x4xf32> -> vector<8x8xf32>
    %417 = arith.mulf %413, %89 : vector<8x8xf32>
    %418 = arith.mulf %416, %90 : vector<8x8xf32>
    %419 = arith.addf %417, %418 : vector<8x8xf32>
    %420 = vector.extract_strided_slice %331 {offsets = [0, 48], sizes = [8, 8], strides = [1, 1]} : vector<8x96xf32> to vector<8x8xf32>
    %421 = vector.extract_strided_slice %420 {offsets = [0, 4], sizes = [8, 4], strides = [1, 1]} : vector<8x8xf32> to vector<8x4xf32>
    %422 = vector.extract_strided_slice %420 {offsets = [0, 0], sizes = [8, 4], strides = [1, 1]} : vector<8x8xf32> to vector<8x4xf32>
    %423 = tpu.concatenate %421, %422 in 1 : vector<8x4xf32>, vector<8x4xf32> -> vector<8x8xf32>
    %424 = arith.mulf %420, %89 : vector<8x8xf32>
    %425 = arith.mulf %423, %90 : vector<8x8xf32>
    %426 = arith.addf %424, %425 : vector<8x8xf32>
    %427 = vector.extract_strided_slice %331 {offsets = [0, 80], sizes = [8, 8], strides = [1, 1]} : vector<8x96xf32> to vector<8x8xf32>
    %428 = arith.truncf %419 : vector<8x8xf32> to vector<8x8xbf16>
    %429 = arith.truncf %426 : vector<8x8xf32> to vector<8x8xbf16>
    %cst_121 = arith.constant dense<0.000000e+00> : vector<8x8xf32>
    %430 = tpu.matmul %428, %429, %cst_121 {dimension_numbers = #tpu.dot_dimension_numbers<[1], [1], [0], [0], [0, 0, 1, 0], [], []>} : vector<8x8xbf16>, vector<8x8xbf16>, vector<8x8xf32> -> vector<8x8xf32>
    %cst_122 = arith.constant 0.353553385 : f32
    %431 = vector.broadcast %cst_122 : f32 to vector<8x8xf32>
    %432 = arith.mulf %430, %431 : vector<8x8xf32>
    %cst_123 = arith.constant -1.000000e+30 : f32
    %433 = vector.broadcast %cst_123 : f32 to vector<8x8xf32>
    %434 = arith.select %40, %432, %433 : vector<8x8xi1>, vector<8x8xf32>
    %cst_124 = arith.constant dense<0xFF800000> : vector<8xf32>
    %435 = vector.multi_reduction <maximumf>, %434, %cst_124 [1] : vector<8x8xf32> to vector<8xf32>
    %436 = vector.shape_cast %435 : vector<8xf32> to vector<8x1xf32>
    %437 = vector.broadcast %436 : vector<8x1xf32> to vector<8x8xf32>
    %438 = arith.subf %434, %437 : vector<8x8xf32>
    %439 = math.exp %438 : vector<8x8xf32>
    %cst_125 = arith.constant dense<0.000000e+00> : vector<8xf32>
    %440 = vector.multi_reduction <add>, %439, %cst_125 [1] : vector<8x8xf32> to vector<8xf32>
    %441 = vector.shape_cast %440 : vector<8xf32> to vector<8x1xf32>
    %442 = tpu.reciprocal %441 {approx = true} : vector<8x1xf32> -> vector<8x1xf32>
    %443 = vector.broadcast %442 : vector<8x1xf32> to vector<8x8xf32>
    %444 = arith.mulf %439, %443 : vector<8x8xf32>
    %445 = arith.truncf %444 : vector<8x8xf32> to vector<8x8xbf16>
    %446 = arith.truncf %427 : vector<8x8xf32> to vector<8x8xbf16>
    %cst_126 = arith.constant dense<0.000000e+00> : vector<8x8xf32>
    %447 = tpu.matmul %445, %446, %cst_126 {dimension_numbers = #tpu.dot_dimension_numbers<[1], [0], [0], [1], [0, 0, 1, 1], [], []>} : vector<8x8xbf16>, vector<8x8xbf16>, vector<8x8xf32> -> vector<8x8xf32>
    %448 = arith.truncf %447 : vector<8x8xf32> to vector<8x8xbf16>
    %449 = vector.extract_strided_slice %333 {offsets = [16, 0], sizes = [8, 32], strides = [1, 1]} : vector<32x32xbf16> to vector<8x32xbf16>
    %cst_127 = arith.constant dense<0.000000e+00> : vector<8x32xf32>
    %450 = tpu.matmul %448, %449, %cst_127 {dimension_numbers = #tpu.dot_dimension_numbers<[1], [0], [0], [1], [0, 0, 1, 1], [], []>} : vector<8x8xbf16>, vector<8x32xbf16>, vector<8x32xf32> -> vector<8x32xf32>
    %451 = arith.addf %412, %450 : vector<8x32xf32>
    %452 = vector.extract_strided_slice %331 {offsets = [0, 24], sizes = [8, 8], strides = [1, 1]} : vector<8x96xf32> to vector<8x8xf32>
    %453 = vector.extract_strided_slice %452 {offsets = [0, 4], sizes = [8, 4], strides = [1, 1]} : vector<8x8xf32> to vector<8x4xf32>
    %454 = vector.extract_strided_slice %452 {offsets = [0, 0], sizes = [8, 4], strides = [1, 1]} : vector<8x8xf32> to vector<8x4xf32>
    %455 = tpu.concatenate %453, %454 in 1 : vector<8x4xf32>, vector<8x4xf32> -> vector<8x8xf32>
    %456 = arith.mulf %452, %89 : vector<8x8xf32>
    %457 = arith.mulf %455, %90 : vector<8x8xf32>
    %458 = arith.addf %456, %457 : vector<8x8xf32>
    %459 = vector.extract_strided_slice %331 {offsets = [0, 56], sizes = [8, 8], strides = [1, 1]} : vector<8x96xf32> to vector<8x8xf32>
    %460 = vector.extract_strided_slice %459 {offsets = [0, 4], sizes = [8, 4], strides = [1, 1]} : vector<8x8xf32> to vector<8x4xf32>
    %461 = vector.extract_strided_slice %459 {offsets = [0, 0], sizes = [8, 4], strides = [1, 1]} : vector<8x8xf32> to vector<8x4xf32>
    %462 = tpu.concatenate %460, %461 in 1 : vector<8x4xf32>, vector<8x4xf32> -> vector<8x8xf32>
    %463 = arith.mulf %459, %89 : vector<8x8xf32>
    %464 = arith.mulf %462, %90 : vector<8x8xf32>
    %465 = arith.addf %463, %464 : vector<8x8xf32>
    %466 = vector.extract_strided_slice %331 {offsets = [0, 88], sizes = [8, 8], strides = [1, 1]} : vector<8x96xf32> to vector<8x8xf32>
    %467 = arith.truncf %458 : vector<8x8xf32> to vector<8x8xbf16>
    %468 = arith.truncf %465 : vector<8x8xf32> to vector<8x8xbf16>
    %cst_128 = arith.constant dense<0.000000e+00> : vector<8x8xf32>
    %469 = tpu.matmul %467, %468, %cst_128 {dimension_numbers = #tpu.dot_dimension_numbers<[1], [1], [0], [0], [0, 0, 1, 0], [], []>} : vector<8x8xbf16>, vector<8x8xbf16>, vector<8x8xf32> -> vector<8x8xf32>
    %cst_129 = arith.constant 0.353553385 : f32
    %470 = vector.broadcast %cst_129 : f32 to vector<8x8xf32>
    %471 = arith.mulf %469, %470 : vector<8x8xf32>
    %cst_130 = arith.constant -1.000000e+30 : f32
    %472 = vector.broadcast %cst_130 : f32 to vector<8x8xf32>
    %473 = arith.select %40, %471, %472 : vector<8x8xi1>, vector<8x8xf32>
    %cst_131 = arith.constant dense<0xFF800000> : vector<8xf32>
    %474 = vector.multi_reduction <maximumf>, %473, %cst_131 [1] : vector<8x8xf32> to vector<8xf32>
    %475 = vector.shape_cast %474 : vector<8xf32> to vector<8x1xf32>
    %476 = vector.broadcast %475 : vector<8x1xf32> to vector<8x8xf32>
    %477 = arith.subf %473, %476 : vector<8x8xf32>
    %478 = math.exp %477 : vector<8x8xf32>
    %cst_132 = arith.constant dense<0.000000e+00> : vector<8xf32>
    %479 = vector.multi_reduction <add>, %478, %cst_132 [1] : vector<8x8xf32> to vector<8xf32>
    %480 = vector.shape_cast %479 : vector<8xf32> to vector<8x1xf32>
    %481 = tpu.reciprocal %480 {approx = true} : vector<8x1xf32> -> vector<8x1xf32>
    %482 = vector.broadcast %481 : vector<8x1xf32> to vector<8x8xf32>
    %483 = arith.mulf %478, %482 : vector<8x8xf32>
    %484 = arith.truncf %483 : vector<8x8xf32> to vector<8x8xbf16>
    %485 = arith.truncf %466 : vector<8x8xf32> to vector<8x8xbf16>
    %cst_133 = arith.constant dense<0.000000e+00> : vector<8x8xf32>
    %486 = tpu.matmul %484, %485, %cst_133 {dimension_numbers = #tpu.dot_dimension_numbers<[1], [0], [0], [1], [0, 0, 1, 1], [], []>} : vector<8x8xbf16>, vector<8x8xbf16>, vector<8x8xf32> -> vector<8x8xf32>
    %487 = arith.truncf %486 : vector<8x8xf32> to vector<8x8xbf16>
    %488 = vector.extract_strided_slice %333 {offsets = [24, 0], sizes = [8, 32], strides = [1, 1]} : vector<32x32xbf16> to vector<8x32xbf16>
    %cst_134 = arith.constant dense<0.000000e+00> : vector<8x32xf32>
    %489 = tpu.matmul %487, %488, %cst_134 {dimension_numbers = #tpu.dot_dimension_numbers<[1], [0], [0], [1], [0, 0, 1, 1], [], []>} : vector<8x8xbf16>, vector<8x32xbf16>, vector<8x32xf32> -> vector<8x32xf32>
    %490 = arith.addf %451, %489 : vector<8x32xf32>
    %491 = arith.addf %307, %490 : vector<8x32xf32>
    %c1_135 = arith.constant 1 : index
    %c0_136 = arith.constant 0 : index
    %c0_137 = arith.constant 0 : index
    %492 = vector.load %arg14[%c1_135, %c0_136, %c0_137] : memref<2x1x32xbf16, #tpu.memory_space<vmem>>, vector<1x1x32xbf16>
    %493 = vector.shape_cast %492 : vector<1x1x32xbf16> to vector<1x32xbf16>
    %494 = arith.mulf %491, %491 : vector<8x32xf32>
    %cst_138 = arith.constant dense<0.000000e+00> : vector<8xf32>
    %495 = vector.multi_reduction <add>, %494, %cst_138 [1] : vector<8x32xf32> to vector<8xf32>
    %496 = vector.shape_cast %495 : vector<8xf32> to vector<8x1xf32>
    %cst_139 = arith.constant 3.200000e+01 : f32
    %497 = vector.broadcast %cst_139 : f32 to vector<8x1xf32>
    %498 = arith.divf %496, %497 : vector<8x1xf32>
    %cst_140 = arith.constant 9.99999997E-7 : f32
    %499 = vector.broadcast %cst_140 : f32 to vector<8x1xf32>
    %500 = arith.addf %498, %499 : vector<8x1xf32>
    %501 = math.rsqrt %500 : vector<8x1xf32>
    %502 = vector.broadcast %501 : vector<8x1xf32> to vector<8x32xf32>
    %503 = arith.mulf %491, %502 : vector<8x32xf32>
    %504 = arith.extf %493 : vector<1x32xbf16> to vector<1x32xf32>
    %505 = vector.broadcast %504 : vector<1x32xf32> to vector<8x32xf32>
    %506 = arith.mulf %503, %505 : vector<8x32xf32>
    %507 = arith.truncf %506 : vector<8x32xf32> to vector<8x32xbf16>
    %c1_141 = arith.constant 1 : index
    %c0_142 = arith.constant 0 : index
    %c0_143 = arith.constant 0 : index
    %508 = vector.load %arg15[%c1_141, %c0_142, %c0_143] : memref<2x32x128xbf16, #tpu.memory_space<vmem>>, vector<1x32x128xbf16>
    %509 = vector.shape_cast %508 : vector<1x32x128xbf16> to vector<32x128xbf16>
    %cst_144 = arith.constant dense<0.000000e+00> : vector<8x128xf32>
    %510 = tpu.matmul %507, %509, %cst_144 {dimension_numbers = #tpu.dot_dimension_numbers<[1], [0], [0], [1], [0, 0, 1, 1], [], []>} : vector<8x32xbf16>, vector<32x128xbf16>, vector<8x128xf32> -> vector<8x128xf32>
    %511 = vector.extract_strided_slice %510 {offsets = [0, 0], sizes = [8, 64], strides = [1, 1]} : vector<8x128xf32> to vector<8x64xf32>
    %512 = vector.extract_strided_slice %510 {offsets = [0, 64], sizes = [8, 64], strides = [1, 1]} : vector<8x128xf32> to vector<8x64xf32>
    %513 = arith.negf %511 : vector<8x64xf32>
    %514 = math.exp %513 : vector<8x64xf32>
    %cst_145 = arith.constant 1.000000e+00 : f32
    %515 = vector.broadcast %cst_145 : f32 to vector<8x64xf32>
    %516 = arith.addf %515, %514 : vector<8x64xf32>
    %517 = arith.divf %515, %516 : vector<8x64xf32>
    %518 = arith.mulf %511, %517 : vector<8x64xf32>
    %519 = arith.mulf %518, %512 : vector<8x64xf32>
    %520 = arith.truncf %519 : vector<8x64xf32> to vector<8x64xbf16>
    %c1_146 = arith.constant 1 : index
    %c0_147 = arith.constant 0 : index
    %c0_148 = arith.constant 0 : index
    %521 = vector.load %arg16[%c1_146, %c0_147, %c0_148] : memref<2x64x32xbf16, #tpu.memory_space<vmem>>, vector<1x64x32xbf16>
    %522 = vector.shape_cast %521 : vector<1x64x32xbf16> to vector<64x32xbf16>
    %cst_149 = arith.constant dense<0.000000e+00> : vector<8x32xf32>
    %523 = tpu.matmul %520, %522, %cst_149 {dimension_numbers = #tpu.dot_dimension_numbers<[1], [0], [0], [1], [0, 0, 1, 1], [], []>} : vector<8x64xbf16>, vector<64x32xbf16>, vector<8x32xf32> -> vector<8x32xf32>
    %524 = arith.addf %491, %523 : vector<8x32xf32>
    %c0_150 = arith.constant 0 : index
    %c0_151 = arith.constant 0 : index
    %525 = vector.load %arg17[%c0_150, %c0_151] : memref<1x32xbf16, #tpu.memory_space<vmem>>, vector<1x32xbf16>
    %526 = arith.mulf %524, %524 : vector<8x32xf32>
    %cst_152 = arith.constant dense<0.000000e+00> : vector<8xf32>
    %527 = vector.multi_reduction <add>, %526, %cst_152 [1] : vector<8x32xf32> to vector<8xf32>
    %528 = vector.shape_cast %527 : vector<8xf32> to vector<8x1xf32>
    %cst_153 = arith.constant 3.200000e+01 : f32
    %529 = vector.broadcast %cst_153 : f32 to vector<8x1xf32>
    %530 = arith.divf %528, %529 : vector<8x1xf32>
    %cst_154 = arith.constant 9.99999997E-7 : f32
    %531 = vector.broadcast %cst_154 : f32 to vector<8x1xf32>
    %532 = arith.addf %530, %531 : vector<8x1xf32>
    %533 = math.rsqrt %532 : vector<8x1xf32>
    %534 = vector.broadcast %533 : vector<8x1xf32> to vector<8x32xf32>
    %535 = arith.mulf %524, %534 : vector<8x32xf32>
    %536 = arith.extf %525 : vector<1x32xbf16> to vector<1x32xf32>
    %537 = vector.broadcast %536 : vector<1x32xf32> to vector<8x32xf32>
    %538 = arith.mulf %535, %537 : vector<8x32xf32>
    %c0_155 = arith.constant 0 : index
    %c0_156 = arith.constant 0 : index
    %539 = vector.load %arg18[%c0_155, %c0_156] : memref<8x32xf32, #tpu.memory_space<vmem>>, vector<8x32xf32>
    tpu.vector_store %arg18[%c0_155, %c0_156], %538 {strides = array<i32>} : memref<8x32xf32, #tpu.memory_space<vmem>>, vector<8x32xf32>,
    return
  }
}

</mosaic_0001>

<bundles_post_ra>
// kernel: forward.1
= control target key start
LH: loop header
LB: loop body
LE: loop exit
PB: predicated region body
PF: predicated region fallthrough
CT: control target
= control target key end

     0   :  { %s3768_s0 = inlined_call_operand.vmem [shape: s32[8,1], index: 0, kind: input, shape index: {}]   ;;  %s3769_s1 = inlined_call_operand.vmem [shape: s32[1,8], index: 1, kind: input, shape index: {}]   ;;  %s3770_s2 = inlined_call_operand.vmem [shape: bf16[3,32], index: 2, kind: input, shape index: {}]   ;;  %s3771_s3 = inlined_call_operand.vmem [shape: bf16[32,32], index: 3, kind: input, shape index: {}]   ;;  %s3772_s4 = inlined_call_operand.vmem [shape: bf16[1,32], index: 4, kind: input, shape index: {}]   ;;  %s3773_s5 = inlined_call_operand.vmem [shape: bf16[32,32], index: 5, kind: input, shape index: {}]   ;;  %s3774_s6 = inlined_call_operand.vmem [shape: bf16[1,32], index: 6, kind: input, shape index: {}]   ;;  %s3775_s7 = inlined_call_operand.vmem [shape: bf16[128,32], index: 7, kind: input, shape index: {}]   ;;  %s3776_s8 = inlined_call_operand.vmem [shape: f32[8,8], index: 8, kind: input, shape index: {}]   ;;  %s3777_s9 = inlined_call_operand.vmem [shape: f32[8,8], index: 9, kind: input, shape index: {}]   ;;  %s3778_s10 = inlined_call_operand.vmem [shape: bf16[2,1,32], index: 10, kind: input, shape index: {}]   ;;  %s3779_s11 = inlined_call_operand.vmem [shape: bf16[2,32,96], index: 11, kind: input, shape index: {}]   ;;  %s3780_s12 = inlined_call_operand.vmem [shape: bf16[2,1,96], index: 12, kind: input, shape index: {}]   ;;  %s3781_s13 = inlined_call_operand.vmem [shape: bf16[2,32,32], index: 13, kind: input, shape index: {}]   ;;  %s3782_s14 = inlined_call_operand.vmem [shape: bf16[2,1,32], index: 14, kind: input, shape index: {}]   ;;  %s3783_s15 = inlined_call_operand.vmem [shape: bf16[2,32,128], index: 15, kind: input, shape index: {}]   ;;  %s3784_s16 = inlined_call_operand.vmem [shape: bf16[2,64,32], index: 16, kind: input, shape index: {}]   ;;  %s3785_s17 = inlined_call_operand.vmem [shape: bf16[1,32], index: 17, kind: input, shape index: {}]   ;;  %s3786_s18 = inlined_call_operand.hbm [shape: f32[8,32], index: 18, kind: output, shape index: {}]  }
   0x1   :  { %3799 = sst [smem:[#allocation5_spill]] %s3768_s0 }
   0x2   :  { %3800 = sst [smem:[#allocation6_spill]] %s3769_s1 }
   0x3   :  { %3801 = sst [smem:[#allocation7_spill]] %s3770_s2 }
   0x4   :  { %v2884_v0 = vld [vmem:[%s3771_s3] sm:$0xff]   ;;  %v2989_v1 = vmov 0.0   ;;  %v68_v2 = vlaneseq  ;;  %v2885_v3 = vld [vmem:[%s3771_s3 + $0x8] sm:$0xff]   ;;  %vm2990_vm0 = vmmov 0   ;;  %s3802_s1 = sld [smem:[#allocation5_spill]]  ;;  %v2991_v5 = vmov 0  }
   0x5   :  { %2610 = vmatprep.subr.bf16.mxu1 %v2989_v1  ;;  %2626 = vmatprep.subr.bf16.mxu0 %v2989_v1  ;;  %s3803_s21 = sld [smem:[#allocation7_spill]]  ;;  %vm84_vm3 = vcmask 261120   ;;  %s3804_s23 = sld [smem:[#allocation6_spill]] }
   0x6   :  { %2611 = vmatpush3.bf16.msra.mxu1 %v2884_v0  ;;  %2614 = vmatprep.mubr.msk.bf16.mxu1 %vm2990_vm0, %v2989_v1  ;;  %v3144_v9 = vshrl.u32 %v68_v2, 7  ;;  %v207_v12 = vand.u32 127, %v68_v2 }
   0x7   :  { %2612 = vmatprep.subr.bf16.mxu1 %v2989_v1  ;;  %2879 = vset.pattern.permute.xlu0 %v2991_v5 }
   0x8   :  { %2880 = vset.pattern.permute.xlu1 %v2991_v5  ;;  %2642 = vmatprep.mubr.msk.bf16.mxu0 %vm2990_vm0, %v2989_v1  ;;  %v3152_v11 = vsub.s32 0, %v3144_v9 }
   0xa   :  { %v3128_v4 = vld [vmem:[%s3802_s1] sm:$0xff]  ;;  %2613 = vmatpush3.bf16.msra.mxu1 %v2885_v3 }
   0xb   :  { %vm204_vm1 = vcmp.gt.s32.totalorder %v3128_v4, 0  ;;  %vm322_vm2 = vcmp.eq.s32.totalorder %v3128_v4, 5  ;;  %v61_v6 = vld [vmem:[%s3803_s21] sm:$0x3]  ;;  %2618 = vmatprep.subr.bf16.mxu1 %v2989_v1 }
   0xc   :  { %v205_v7 = vsel %vm204_vm1, %v3128_v4, 0  ;;  %v341_v8 = vsel %vm322_vm2, 1, %v2991_v5  ;;  %v323_v10 = vld [vmem:[%s3804_s23] sm:$0x1] }
   0xd   :  { %209 = vperm.xlu0 %2879, %v205_v7   ;;  %343 = vperm.xlu1 %2880, %v341_v8   ;;  %vm324_vm4 = vcmp.eq.s32.totalorder %v323_v10, 5 }
   0xe   :  { %2615 = vmatmul.mubr.msk.bf16.vlgmr.msra.gmra.mrb[0].mxu1 %vm84_vm3, %v61_v6  ;;  %v2451_v13 = vsel %vm324_vm4, 1.0, %v2989_v1 }
   0xf   :  { %2622 = vmatprep.mubr.msk.bf16.mxu1 %vm2990_vm0, %v2989_v1 }
  0x10   :  { %23 = vsyncpa [#allocation3], 0  ;;  %v331_v14 = vrot.slane %v2451_v13, %v3152_v11  ;;  %vm3159_vm5 = vcmp.le.s32.totalorder %v207_v12, %v3144_v9  ;;  %vm334_vm6 = vcmask 64512   ;;  %v2886_v18 = vld [vmem:[%s3775_s7] sm:$0xff]   ;;  %v2887_v19 = vld [vmem:[%s3775_s7 + $0x8] sm:$0xff]   ;;  %v2993_v36 = vmov 1  }
  0x11   :  { %2627 = vmatpush3.bf16.msra.mxu0 %v2886_v18  ;;  %v2888_v20 = vld [vmem:[%s3775_s7 + $0x10] sm:$0xff]   ;;  %v2889_v21 = vld [vmem:[%s3775_s7 + $0x18] sm:$0xff]   ;;  %v2890_v22 = vld [vmem:[%s3775_s7 + $0x20] sm:$0xff]   ;;  %v2992_v29 = vmov 1.0|1.0   ;;  %v2453_v37 = vsel %vm322_vm2, 1.0, %v2989_v1 }
  0x12   :  { %v333_v16 = vsel %vm3159_vm5, %v331_v14, 0.0  ;;  %2628 = vmatprep.subr.bf16.mxu0 %v2989_v1  ;;  %v2891_v23 = vld [vmem:[%s3773_s5] sm:$0xff]   ;;  %v2892_v24 = vld [vmem:[%s3775_s7 + $0x28] sm:$0xff]   ;;  %v2894_v26 = vld [vmem:[%s3775_s7 + $0x30] sm:$0xff]   ;;  %v2994_v38 = vmov 2   ;;  %v379_v39 = vsub.f32 1.0, %v2453_v37 }
  0x13   :  { %v335_v17 = vsel %vm334_vm6, %v333_v16, 0.0  ;;  %2619 = vmatpush3.bf16.msra.mxu1 %v2891_v23  ;;  %v2893_v25 = vld [vmem:[%s3773_s5 + $0x8] sm:$0xff]   ;;  %v2895_v27 = vld [vmem:[%s3775_s7 + $0x38] sm:$0xff]   ;;  %v66_v40 = vld [vmem:[%s3772_s4] sm:$0x1]  ;;  %v364_v4 = vsub.s32 1, %v3144_v9 }
  0x14   :  { %2620 = vmatprep.subr.bf16.mxu1 %v2989_v1  ;;  %v67_v41 = vunpack.c.l.bf16 %v66_v40  ;;  %v142_v63 = vld [vmem:[%s3774_s6] sm:$0x1]  ;;  %s2995_s21 = smov 100   ;;  %s2996_s22 = smov 92   ;;  %vm482_vm12 = vcmask 31744   ;;  %vm577_vm13 = vcmask 1043456  }
  0x15   :  { %2629 = vmatpush3.bf16.msra.mxu0 %v2887_v19  ;;  %v143_v0 = vunpack.c.l.bf16 %v142_v63  ;;  %s2997_s24 = smov 84   ;;  %s2998_s25 = smov 32   ;;  %vm1361_vm14 = vcmask 523264  }
  0x16   :  { %2630 = vmatprep.subr.bf16.mxu0 %v2989_v1  ;;  %v71_v42 = vrot.slane %v67_v41, %v3152_v11  ;;  %s2999_s26 = smov 116   ;;  %s3000_s27 = smov 40  }
  0x17   :  { %2621 = vmatpush3.bf16.msra.mxu1 %v2893_v25  ;;  %v147_v3 = vrot.slane %v143_v0, %v3152_v11  ;;  %s3001_s7 = smov 124   ;;  %s3002_s4 = smov 8  }
  0x18   :  { %2646 = vmatprep.subr.bf16.mxu1 %v2989_v1  ;;  %s3003_s28 = smov 96   ;;  %s3004_s6 = smov 4  }
  0x19   :  { %2631 = vmatpush3.bf16.msra.mxu0 %v2888_v20  ;;  %s3005_s29 = smov 64   ;;  %s3006_s30 = smov 88  }
  0x1a   :  { %2632 = vmatprep.subr.bf16.mxu0 %v2989_v1  ;;  %s3007_s0 = smov 120   ;;  %s3794_s19 = smov 56  }
  0x1b   :  { %s3798_s1 = smov 108   ;;  %s3796_s20 = smov 48  }
  0x1c   :  { %s3011_s3 = smov 76   ;;  %s3793_s5 = smov 16  }
  0x1d   :  { %2633 = vmatpush3.bf16.msra.mxu0 %v2889_v21  ;;  %s3792_s23 = smov 80   ;;  %s3787_s2 = smov 112  }
  0x1e   :  { %2634 = vmatprep.subr.bf16.mxu0 %v2989_v1 }
  0x21   :  { %2635 = vmatpush3.bf16.msra.mxu0 %v2890_v22 }
  0x22   :  { %2636 = vmatprep.subr.bf16.mxu0 %v2989_v1 }
  0x25   :  { %2637 = vmatpush3.bf16.msra.mxu0 %v2892_v24 }
  0x26   :  { %2638 = vmatprep.subr.bf16.mxu0 %v2989_v1 }
  0x29   :  { %2639 = vmatpush3.bf16.msra.mxu0 %v2894_v26 }
  0x2a   :  { %2640 = vmatprep.subr.bf16.mxu0 %v2989_v1 }
  0x2c   :  { %336 = vadd.xlane.f32.xlu0 %v335_v17 }
  0x2d   :  { %2641 = vmatpush3.bf16.msra.mxu0 %v2895_v27  ;;  %v2896_v27 = vld [vmem:[%s3779_s11] sm:$0xff]  }
  0x2e   :  { %2672 = vmatprep.subr.bf16.mxu0 %v2989_v1 }
  0x8c   :  { %v210_v28 = vpop.permute.xlu0 %209  ;;  %v344_v32 = vpop.permute.xlu1 %343 }
  0x8d   :  { %vm211_vm7 = vcmp.eq.s32.totalorder %v207_v12, %v210_v28  ;;  %vm345_vm9 = vcmp.eq.s32.totalorder %v344_v32, 1  ;;  %v2897_v28 = vld [vmem:[%s3779_s11 + $0x8] sm:$0xff]   ;;  %v389_v32 = vld [vmem:[%s3778_s10] sm:$0x1] }
  0x8e   :  { %vm2449_vm8 = vmpackc.low %vm211_vm7, %vm211_vm7 }
  0x8f   :  { %2643 = vmatmul.mubr.msk.bf16.vlgmr.msra.gmra.mrb[0].mxu0 %vm2449_vm8, %v2992_v29 }
  0x90   :  { %2674 = vmatprep.mubr.msk.bf16.mxu0 %vm2990_vm0, %v2989_v1 }
  0xb9   :  { %v337_v30 = vpop.xlane.xlu0 %336 }
  0xba   :  { %v2846_v31 = vtrunc.f32 %v337_v30 }
  0xbc   :  { %v2847_v33 = vcvt.f32.s32 %v2846_v31 }
  0xbe   :  { %v2452_v34 = vadd.s32 4294967295, %v2847_v33  ;;  %v399_v33 = vunpack.c.l.bf16 %v389_v32 }
  0xc0   :  { %vm340_vm10 = vcmp.eq.s32.totalorder %v207_v12, %v2452_v34  ;;  %v403_v34 = vrot.slane %v399_v33, %v3152_v11 }
  0xc1   :  { %vm346_vm11 = vmand %vm340_vm10, %vm345_vm9 }
  0xc2   :  { %v347_v35 = vsel %vm346_vm11, 1.0, %v2989_v1 }
  0xc3   :  { %350 = vperm.xlu1 %2880, %v347_v35  }
  0xc7   :  { %2881 = vset.pattern.permute.xlu1 %v2993_v36 }
  0xc8   :  { %359 = vperm.xlu1 %2881, %v347_v35  }
  0xcc   :  { %2882 = vset.pattern.permute.xlu1 %v2994_v38 }
  0xcd   :  { %369 = vperm.xlu1 %2882, %v347_v35  }
  0xd1   :  { %2883 = vset.pattern.permute.xlu1 %v2991_v5  ;;  %v374_v5 = vsub.s32 2, %v3144_v9 }
  0xd2   :  { %382 = vperm.xlu1 %2883, %v379_v39   ;;  %v410_v39 = vld [vmem:[%s3780_s12] sm:$0x1] }
  0xd3   :  { %v411_v40 = vunpack.c.l.bf16 %v410_v39 }
  0xd5   :  { %v415_v41 = vrot.slane %v411_v40, %v3152_v11 }
  0xe1   :  { %v122_v43 = vpop.f32.mrb[0].mxu1 }
  0xe2   :  { %v123_v44 = vadd.f32 %v122_v43, %v71_v42  ;;  %v2616_v45 = vpop.f32.mrb[1].mxu1 }
  0xe3   :  { %v125_v46 = vpop.f32.mrb[2].mxu1 }
  0xe4   :  { %v128_v47 = vmul.f32 %v123_v44, %v123_v44  ;;  %v2617_v48 = vpop.f32.mrb[3].mxu1 }
  0xe5   :  { %v3274_v48 = vld [vmem:[%s3777_s9] sm:$0xff] }
  0xe6   :  { %v129_v49 = vmul.f32 %v128_v47, %v123_v44  ;;  %v3261_v47 = vld [vmem:[%s3776_s8] sm:$0xff]  ;;  %s3791_s8 = smov 68  }
  0xe8   :  { %v130_v50 = vmul.f32 0.044715, %v129_v49 }
  0xea   :  { %v131_v51 = vadd.f32 %v130_v50, %v123_v44 }
  0xec   :  { %v132_v52 = vmul.f32 0.7978846, %v131_v51 }
  0xee   :  { %2912 = vtanh.f32 %v132_v52 }
  0xf8   :  { %v2913_v53 = vpop.eup %2912 }
  0xf9   :  { %v134_v54 = vadd.f32 1.0, %v2913_v53 }
  0xfb   :  { %v135_v55 = vmul.f32 0.5, %v134_v54 }
  0xfd   :  { %v136_v56 = vmul.f32 %v135_v55, %v123_v44 }
  0xff   :  { %v137_v57 = vpack.c.bf16 %v136_v56, %v136_v56 }
 0x101   :  { %2623 = vmatmul.mubr.msk.bf16.vlgmr.msra.gmra.mrb[4].mxu1 %vm84_vm3, %v137_v57 }
 0x102   :  { %2650 = vmatprep.mubr.msk.bf16.mxu1 %vm2990_vm0, %v2989_v1  ;;  %2647 = vmatpush3.bf16.msra.mxu1 %v2896_v27 }
 0x103   :  { %2648 = vmatprep.subr.bf16.mxu1 %v2989_v1 }
 0x106   :  { %2649 = vmatpush3.bf16.msra.mxu1 %v2897_v28 }
 0x107   :  { %2654 = vmatprep.subr.bf16.mxu1 %v2989_v1 }
 0x142   :  { %v351_v62 = vpop.permute.xlu1 %350 }
 0x147   :  { %v360_v2 = vpop.permute.xlu1 %359 }
 0x14c   :  { %v370_v6 = vpop.permute.xlu1 %369 }
 0x151   :  { %v383_v18 = vpop.permute.xlu1 %382 }
 0x162   :  { %v313_v58 = vpop.f32.mrb[0].mxu0 }
 0x163   :  { %v2644_v59 = vpop.f32.mrb[1].mxu0  ;;  %v385_v23 = vmul.f32 %v383_v18, %v313_v58 }
 0x164   :  { %v316_v60 = vpop.f32.mrb[2].mxu0 }
 0x165   :  { %v2645_v61 = vpop.f32.mrb[3].mxu0 }
 0x1d4   :  { %v197_v7 = vpop.f32.mrb[4].mxu1 }
 0x1d5   :  { %v198_v8 = vadd.f32 %v197_v7, %v147_v3  ;;  %v2624_v10 = vpop.f32.mrb[5].mxu1 }
 0x1d6   :  { %v200_v12 = vpop.f32.mrb[6].mxu1 }
 0x1d7   :  { %v356_v13 = vrot.slane %v198_v8, %v3152_v11  ;;  %v365_v14 = vrot.slane %v198_v8, %v364_v4  ;;  %v375_v16 = vrot.slane %v198_v8, %v374_v5  ;;  %v2625_v17 = vpop.f32.mrb[7].mxu1 }
 0x1d9   :  { %v357_v19 = vmul.f32 %v356_v13, %v351_v62  ;;  %v366_v20 = vmul.f32 %v365_v14, %v360_v2  ;;  %v376_v22 = vmul.f32 %v375_v16, %v370_v6 }
 0x1db   :  { %v367_v21 = vadd.f32 %v366_v20, %v357_v19 }
 0x1dd   :  { %v377_v24 = vadd.f32 %v376_v22, %v367_v21 }
 0x1df   :  { %v3227_v25 = vadd.f32 %v385_v23, %v377_v24 }
 0x1e1   :  { %v390_v9 = vmul.f32 %v3227_v25, %v3227_v25 }
 0x1e3   :  { %v391_v26 = vsel %vm84_vm3, %v390_v9, 0.0 }
 0x1e4   :  { %392 = vadd.xlane.f32.xlu1 %v391_v26 }
 0x271   :  { %v393_v29 = vpop.xlane.xlu1 %392 }
 0x272   :  { %v395_v30 = vmul.f32 0.03125, %v393_v29 }
 0x274   :  { %v396_v31 = vadd.f32 1e-06, %v395_v30 }
 0x276   :  { %2914 = vrsqrt.f32 %v396_v31 }
 0x280   :  { %v2915_v35 = vpop.eup %2914 }
 0x281   :  { %v398_v36 = vmul.f32 %v2915_v35, %v3227_v25 }
 0x283   :  { %v404_v37 = vmul.f32 %v403_v34, %v398_v36 }
 0x285   :  { %v405_v38 = vpack.c.bf16 %v404_v37, %v404_v37 }
 0x287   :  { %2651 = vmatmul.mubr.msk.bf16.vlgmr.msra.gmra.mrb[8].mxu1 %vm84_vm3, %v405_v38 }
 0x288   :  { %2656 = vmatprep.mubr.msk.bf16.mxu1 %vm2990_vm0, %v2989_v1 }
 0x35a   :  { %v465_v42 = vpop.f32.mrb[8].mxu1 }
 0x35b   :  { %v3252_v43 = vadd.f32 %v465_v42, %v415_v41  ;;  %v2652_v44 = vpop.f32.mrb[9].mxu1 }
 0x35c   :  { %v468_v45 = vpop.f32.mrb[10].mxu1 }
 0x35d   :  { %490 = vrot.lane.b32.xlu1 %v3252_v43, %s2995_s21  ;;  %487 = vrot.lane.b32.xlu0 %v3252_v43, %s2996_s22  ;;  %v2653_v46 = vpop.f32.mrb[11].mxu1  ;;  %v484_v6 = vmul.f32 %v3252_v43, %v3261_v47  ;;  %v3323_v24 = vpack.c.bf16 %v3252_v43, %v3252_v43 }
 0x361   :  { %636 = vrot.lane.b32.xlu1 %v3252_v43, %s2997_s24  ;;  %495 = vrot.lane.b32.xlu0 %v3261_v47, %s2998_s25 }
 0x365   :  { %622 = vrot.lane.b32.xlu1 %v3252_v43, %s2999_s26 }
 0x369   :  { %640 = vrot.lane.b32.xlu1 %v3261_v47, %s3000_s27 }
 0x3cf   :  { %v3276_v49 = vpop.permute.xlu1 %490  ;;  %v488_v50 = vpop.permute.xlu0 %487 }
 0x3d0   :  { %v493_v51 = vsel %vm482_vm12, %v488_v50, %v3276_v49 }
 0x3d1   :  { %v499_v52 = vmul.f32 %v493_v51, %v3274_v48 }
 0x3d3   :  { %v3281_v53 = vpop.permute.xlu1 %636  ;;  %501 = vrot.lane.b32.xlu0 %v499_v52, %s2998_s25  ;;  %v3292_v56 = vpop.permute.xlu0 %495 }
 0x3d4   :  { %v639_v54 = vsel %vm482_vm12, %v3281_v53, %v488_v50  ;;  %v498_v57 = vmul.f32 %v3292_v56, %v3252_v43 }
 0x3d5   :  { %v644_v55 = vmul.f32 %v639_v54, %v3274_v48 }
 0x3d7   :  { %646 = vrot.lane.b32.xlu1 %v644_v55, %s3000_s27  ;;  %476 = vrot.lane.b32.xlu0 %v3252_v43, %s3001_s7  ;;  %v3296_v61 = vpop.permute.xlu1 %622 }
 0x3db   :  { %626 = vrot.lane.b32.xlu1 %v3261_v47, %s3002_s4  ;;  %v3317_v20 = vpop.permute.xlu1 %640 }
 0x3dc   :  { %v643_v22 = vmul.f32 %v3317_v20, %v3252_v43 }
 0x445   :  { %v502_v58 = vpop.permute.xlu0 %501 }
 0x446   :  { %v504_v59 = vadd.f32 %v502_v58, %v498_v57 }
 0x448   :  { %v506_v60 = vpack.c.bf16 %v504_v59, %v504_v59 }
 0x449   :  { %v477_v62 = vpop.permute.xlu0 %476  ;;  %v647_v21 = vpop.permute.xlu1 %646 }
 0x44a   :  { %v625_v63 = vsel %vm482_vm12, %v3296_v61, %v477_v62  ;;  %508 = vrot.lane.b32.xlu0 %v506_v60, %s3003_s28  ;;  %v649_v23 = vadd.f32 %v647_v21, %v643_v22  ;;  %v472_v22 = vld [vmem:[%s3781_s13 + $0x4] sm:$0xf] }
 0x44b   :  { %v630_v0 = vmul.f32 %v625_v63, %v3274_v48 }
 0x44c   :  { %v651_v9 = vpack.c.bf16 %v649_v23, %v649_v23  ;;  %v771_v23 = vsel %vm577_vm13, %v472_v22, 0 }
 0x44d   :  { %632 = vrot.lane.b32.xlu1 %v630_v0, %s3002_s4  ;;  %v3331_v33 = vpop.permute.xlu1 %626 }
 0x44e   :  { %479 = vrot.lane.b32.xlu0 %v3252_v43, %s3004_s6  ;;  %v629_v35 = vmul.f32 %v3331_v33, %v3252_v43 }
 0x4bc   :  { %v509_v2 = vpop.permute.xlu0 %508 }
 0x4bd   :  { %v514_v3 = vsel %vm334_vm6, %v509_v2, 0 }
 0x4be   :  { %2655 = vmatpush3.bf16.xpose.msra.mxu1 %v514_v3 }
 0x4bf   :  { %2660 = vmatprep.subr.bf16.mxu1 %v2989_v1  ;;  %v633_v34 = vpop.permute.xlu1 %632 }
 0x4c0   :  { %v480_v4 = vpop.permute.xlu0 %479  ;;  %v635_v36 = vadd.f32 %v633_v34, %v629_v35 }
 0x4c1   :  { %v483_v5 = vsel %vm482_vm12, %v477_v62, %v480_v4 }
 0x4c2   :  { %v485_v7 = vmul.f32 %v483_v5, %v3274_v48  ;;  %v650_v37 = vpack.c.bf16 %v635_v36, %v635_v36 }
 0x4c4   :  { %v486_v8 = vadd.f32 %v485_v7, %v484_v6 }
 0x4c6   :  { %v505_v10 = vpack.c.bf16 %v486_v8, %v486_v8 }
 0x4c8   :  { %2657 = vmatmul.mubr.msk.bf16.vlgmr.msra.gmra.mrb[12].mxu1 %vm334_vm6, %v505_v10 }
 0x4c9   :  { %2662 = vmatprep.mubr.msk.bf16.mxu1 %vm2990_vm0, %v2989_v1 }
 0x59b   :  { %v550_v12 = vpop.f32.mrb[12].mxu1 }
 0x59c   :  { %v556_v13 = vmul.f32 0.35355338, %v550_v12  ;;  %v2658_v14 = vpop.f32.mrb[13].mxu1 }
 0x59d   :  { %v553_v16 = vpop.f32.mrb[14].mxu1 }
 0x59e   :  { %v2659_v17 = vpop.f32.mrb[15].mxu1  ;;  %v557_v18 = vsel %vm3159_vm5, %v556_v13, -1e+30 }
 0x59f   :  { %v558_v19 = vsel %vm334_vm6, %v557_v18, -inf  ;;  %v471_v17 = vld [vmem:[%s3781_s13] sm:$0xf] }
 0x5a0   :  { %559 = vmax.xlane.f32.xlu0 %v558_v19  ;;  %v817_v21 = vsel %vm577_vm13, %v471_v17, 0 }
 0x5b6   :  { %572 = vrot.lane.b32.xlu0 %v3323_v24, %s3005_s29 }
 0x5ba   :  { %656 = vrot.lane.b32.xlu0 %v651_v9, %s3006_s30 }
 0x62d   :  { %v560_v26 = vpop.xlane.xlu0 %559 }
 0x62e   :  { %v561_v27 = vsub.f32 %v557_v18, %v560_v26 }
 0x630   :  { %v562_v28 = vmul.f32 1.442695, %v561_v27 }
 0x631   :  { %v573_v29 = vpop.permute.xlu0 %572 }
 0x632   :  { %2916 = vpow2.f32 %v562_v28  ;;  %v579_v30 = vsel %vm577_vm13, %v573_v29, 0 }
 0x633   :  { %2661 = vmatpush3.bf16.msra.mxu1 %v579_v30 }
 0x634   :  { %2666 = vmatprep.subr.bf16.mxu1 %v2989_v1 }
 0x635   :  { %v657_v41 = vpop.permute.xlu0 %656 }
 0x636   :  { %v662_v44 = vsel %vm334_vm6, %v657_v41, 0 }
 0x63c   :  { %v2917_v31 = vpop.eup %2916 }
 0x63d   :  { %v564_v32 = vsel %vm334_vm6, %v2917_v31, 0.0 }
 0x63e   :  { %565 = vadd.xlane.f32.xlu1 %v564_v32 }
 0x64f   :  { %653 = vrot.lane.b32.xlu1 %v650_v37, %s3007_s0 }
 0x6cb   :  { %v566_v38 = vpop.xlane.xlu1 %565 }
 0x6cc   :  { %2918 = vrcp.f32 %v566_v38 }
 0x6cf   :  { %v654_v45 = vpop.permute.xlu1 %653 }
 0x6d6   :  { %v2919_v39 = vpop.eup %2918 }
 0x6d7   :  { %v568_v40 = vmul.f32 %v2919_v39, %v2917_v31 }
 0x6d9   :  { %v569_v42 = vpack.c.bf16 %v568_v40, %v568_v40 }
 0x6db   :  { %2663 = vmatmul.mubr.msk.bf16.vlgmr.msra.gmra.mrb[16].mxu1 %vm334_vm6, %v569_v42 }
 0x6dc   :  { %2667 = vmatpush3.bf16.xpose.msra.mxu1 %v662_v44  ;;  %2668 = vmatprep.mubr.msk.bf16.mxu1 %vm2990_vm0, %v2989_v1 }
 0x6dd   :  { %2678 = vmatprep.subr.bf16.mxu1 %v2989_v1 }
 0x6e3   :  { %2669 = vmatmul.mubr.msk.bf16.vlgmr.msra.gmra.mrb[20].mxu1 %vm334_vm6, %v654_v45 }
 0x6e4   :  { %2680 = vmatprep.mubr.msk.bf16.mxu1 %vm2990_vm0, %v2989_v1  ;;  %2679 = vmatpush3.bf16.msra.mxu1 %v771_v23 }
 0x6e5   :  { %2690 = vmatprep.subr.bf16.mxu1 %v2989_v1 }
 0x7ae   :  { %v615_v46 = vpop.f32.mrb[16].mxu1 }
 0x7af   :  { %v2664_v50 = vpop.f32.mrb[17].mxu1 }
 0x7b0   :  { %v618_v51 = vpop.f32.mrb[18].mxu1 }
 0x7b1   :  { %v2665_v52 = vpop.f32.mrb[19].mxu1 }
 0x7b6   :  { %v698_v54 = vpop.f32.mrb[20].mxu1 }
 0x7b7   :  { %v704_v55 = vmul.f32 0.35355338, %v698_v54  ;;  %v2670_v57 = vpop.f32.mrb[21].mxu1 }
 0x7b8   :  { %v701_v58 = vpop.f32.mrb[22].mxu1 }
 0x7b9   :  { %v2671_v59 = vpop.f32.mrb[23].mxu1  ;;  %v705_v60 = vsel %vm3159_vm5, %v704_v55, -1e+30 }
 0x7ba   :  { %v706_v62 = vsel %vm334_vm6, %v705_v60, -inf }
 0x7bb   :  { %707 = vmax.xlane.f32.xlu0 %v706_v62 }
 0x7d1   :  { %718 = vrot.lane.b32.xlu0 %v3323_v24, %s3794_s19 }
 0x7d5   :  { %859 = vrot.lane.b32.xlu0 %v3252_v43, %s3798_s1  ;;  %s3816_s1 = smov 72  }
 0x7d9   :  { %877 = vrot.lane.b32.xlu0 %v3261_v47, %s3796_s20 }
 0x848   :  { %v708_v63 = vpop.xlane.xlu0 %707 }
 0x849   :  { %v709_v0 = vsub.f32 %v705_v60, %v708_v63 }
 0x84b   :  { %v710_v2 = vmul.f32 1.442695, %v709_v0 }
 0x84c   :  { %v719_v3 = vpop.permute.xlu0 %718 }
 0x84d   :  { %2920 = vpow2.f32 %v710_v2  ;;  %v724_v4 = vsel %vm577_vm13, %v719_v3, 0 }
 0x84e   :  { %2673 = vmatpush3.bf16.msra.mxu0 %v724_v4 }
 0x84f   :  { %2684 = vmatprep.subr.bf16.mxu0 %v2989_v1 }
 0x850   :  { %v3361_v13 = vpop.permute.xlu0 %859 }
 0x851   :  { %v862_v16 = vsel %vm482_vm12, %v3361_v13, %v3296_v61  ;;  %v621_v61 = vpack.c.bf16 %v615_v46, %v615_v46  ;;  %v1051_v57 = vsel %vm482_vm12, %v3276_v49, %v3361_v13 }
 0x852   :  { %v1056_v58 = vmul.f32 %v1051_v57, %v3274_v48 }
 0x854   :  { %v3387_v9 = vpop.permute.xlu0 %877 }
 0x855   :  { %v880_v26 = vmul.f32 %v3387_v9, %v3252_v43 }
 0x857   :  { %v2921_v5 = vpop.eup %2920 }
 0x858   :  { %v712_v6 = vsel %vm334_vm6, %v2921_v5, 0.0 }
 0x859   :  { %713 = vadd.xlane.f32.xlu1 %v712_v6 }
 0x86a   :  { %873 = vrot.lane.b32.xlu1 %v3252_v43, %s3011_s3 }
 0x8e6   :  { %v714_v7 = vpop.xlane.xlu1 %713 }
 0x8e7   :  { %2922 = vrcp.f32 %v714_v7 }
 0x8ea   :  { %v874_v8 = vpop.permute.xlu1 %873 }
 0x8eb   :  { %v876_v10 = vsel %vm482_vm12, %v874_v8, %v3281_v53  ;;  %v867_v53 = vmul.f32 %v862_v16, %v3274_v48 }
 0x8ec   :  { %v881_v12 = vmul.f32 %v876_v10, %v3274_v48 }
 0x8ee   :  { %883 = vrot.lane.b32.xlu0 %v881_v12, %s3796_s20 }
 0x8f1   :  { %v2923_v14 = vpop.eup %2922 }
 0x8f2   :  { %v716_v18 = vmul.f32 %v2923_v14, %v2921_v5  ;;  %863 = vrot.lane.b32.xlu0 %v3261_v47, %s3793_s5 }
 0x8f4   :  { %v717_v19 = vpack.c.bf16 %v716_v18, %v716_v18 }
 0x8f6   :  { %2675 = vmatmul.mubr.msk.bf16.vlgmr.msra.gmra.mrb[4].mxu0 %vm334_vm6, %v717_v19  ;;  %869 = vrot.lane.b32.xlu0 %v867_v53, %s3793_s5 }
 0x8f7   :  { %2685 = vmatpush3.bf16.msra.mxu0 %v817_v21  ;;  %2686 = vmatprep.mubr.msk.bf16.mxu0 %vm2990_vm0, %v2989_v1 }
 0x8f8   :  { %2696 = vmatprep.subr.bf16.mxu0 %v2989_v1 }
 0x8fe   :  { %2687 = vmatmul.mubr.msk.bf16.vlgmr.msra.gmra.mrb[8].mxu0 %vm334_vm6, %v621_v61 }
 0x8ff   :  { %2698 = vmatprep.mubr.msk.bf16.mxu0 %vm2990_vm0, %v2989_v1 }
 0x960   :  { %v884_v27 = vpop.permute.xlu0 %883 }
 0x961   :  { %v886_v28 = vadd.f32 %v884_v27, %v880_v26 }
 0x963   :  { %v888_v29 = vpack.c.bf16 %v886_v28, %v886_v28 }
 0x964   :  { %v3391_v30 = vpop.permute.xlu0 %863 }
 0x965   :  { %893 = vrot.lane.b32.xlu1 %v888_v29, %s3792_s23  ;;  %v866_v31 = vmul.f32 %v3391_v30, %v3252_v43 }
 0x968   :  { %v870_v32 = vpop.permute.xlu0 %869 }
 0x969   :  { %v872_v34 = vadd.f32 %v870_v32, %v866_v31  ;;  %1062 = vrot.lane.b32.xlu1 %v3252_v43, %s3791_s8 }
 0x96b   :  { %v887_v35 = vpack.c.bf16 %v872_v34, %v872_v34 }
 0x96d   :  { %1066 = vrot.lane.b32.xlu1 %v3261_v47, %s3794_s19  ;;  %890 = vrot.lane.b32.xlu0 %v887_v35, %s3787_s2  ;;  %s3788_s2 = smov 24  }
 0x9c9   :  { %v760_v36 = vpop.f32.mrb[4].mxu0 }
 0x9ca   :  { %v766_v37 = vpack.c.bf16 %v760_v36, %v760_v36  ;;  %v2676_v38 = vpop.f32.mrb[5].mxu0 }
 0x9cb   :  { %v763_v39 = vpop.f32.mrb[6].mxu0 }
 0x9cc   :  { %v2677_v40 = vpop.f32.mrb[7].mxu0  ;;  %2681 = vmatmul.mubr.msk.bf16.vlgmr.msra.gmra.mrb[24].mxu1 %vm334_vm6, %v766_v37  ;;  %v473_v37 = vld [vmem:[%s3781_s13 + $0x8] sm:$0xf] }
 0x9cd   :  { %2692 = vmatprep.mubr.msk.bf16.mxu1 %vm2990_vm0, %v2989_v1  ;;  %v1008_v38 = vsel %vm577_vm13, %v473_v37, 0 }
 0x9d1   :  { %v853_v41 = vpop.f32.mrb[8].mxu0 }
 0x9d2   :  { %v2688_v42 = vpop.f32.mrb[9].mxu0 }
 0x9d3   :  { %v856_v44 = vpop.f32.mrb[10].mxu0 }
 0x9d4   :  { %v2689_v45 = vpop.f32.mrb[11].mxu0 }
 0x9d7   :  { %v894_v46 = vpop.permute.xlu1 %893 }
 0x9d8   :  { %v899_v50 = vsel %vm334_vm6, %v894_v46, 0 }
 0x9d9   :  { %2691 = vmatpush3.bf16.xpose.msra.mxu1 %v899_v50 }
 0x9da   :  { %2702 = vmatprep.subr.bf16.mxu1 %v2989_v1 }
 0x9db   :  { %v1063_v51 = vpop.permute.xlu1 %1062 }
 0x9dc   :  { %v1065_v52 = vsel %vm482_vm12, %v1063_v51, %v874_v8 }
 0x9dd   :  { %v1070_v54 = vmul.f32 %v1065_v52, %v3274_v48 }
 0x9df   :  { %1072 = vrot.lane.b32.xlu1 %v1070_v54, %s3794_s19  ;;  %v891_v55 = vpop.permute.xlu0 %890  ;;  %v3424_v8 = vpop.permute.xlu1 %1066 }
 0x9e0   :  { %2693 = vmatmul.mubr.msk.bf16.vlgmr.msra.gmra.mrb[28].mxu1 %vm334_vm6, %v891_v55  ;;  %v1069_v26 = vmul.f32 %v3424_v8, %v3252_v43 }
 0x9e1   :  { %2704 = vmatprep.mubr.msk.bf16.mxu1 %vm2990_vm0, %v2989_v1  ;;  %2703 = vmatpush3.bf16.msra.mxu1 %v1008_v38 }
 0x9e2   :  { %2714 = vmatprep.subr.bf16.mxu1 %v2989_v1 }
 0x9e3   :  { %1052 = vrot.lane.b32.xlu1 %v3261_v47, %s3788_s2 }
 0x9e7   :  { %1058 = vrot.lane.b32.xlu1 %v1056_v58, %s3788_s2  ;;  %s3789_s2 = smov 104  }
 0xa51   :  { %v1073_v10 = vpop.permute.xlu1 %1072 }
 0xa52   :  { %v1075_v27 = vadd.f32 %v1073_v10, %v1069_v26 }
 0xa54   :  { %v1077_v28 = vpack.c.bf16 %v1075_v27, %v1075_v27 }
 0xa55   :  { %v3426_v12 = vpop.permute.xlu1 %1052 }
 0xa56   :  { %v1055_v14 = vmul.f32 %v3426_v12, %v3252_v43 }
 0xa59   :  { %v1059_v13 = vpop.permute.xlu1 %1058 }
 0xa5a   :  { %v1061_v16 = vadd.f32 %v1059_v13, %v1055_v14 }
 0xa5c   :  { %v1076_v17 = vpack.c.bf16 %v1061_v16, %v1061_v16 }
 0xa9f   :  { %v807_v59 = vpop.f32.mrb[24].mxu1 }
 0xaa0   :  { %v3419_v60 = vadd.f32 %v853_v41, %v807_v59  ;;  %v2682_v62 = vpop.f32.mrb[25].mxu1 }
 0xaa1   :  { %v810_v63 = vpop.f32.mrb[26].mxu1 }
 0xaa2   :  { %v2683_v0 = vpop.f32.mrb[27].mxu1 }
 0xab3   :  { %v935_v2 = vpop.f32.mrb[28].mxu1 }
 0xab4   :  { %v941_v3 = vmul.f32 0.35355338, %v935_v2  ;;  %v2694_v4 = vpop.f32.mrb[29].mxu1 }
 0xab5   :  { %v938_v5 = vpop.f32.mrb[30].mxu1 }
 0xab6   :  { %v2695_v6 = vpop.f32.mrb[31].mxu1  ;;  %v942_v49 = vsel %vm3159_vm5, %v941_v3, -1e+30  ;;  %v474_v3 = vld [vmem:[%s3781_s13 + $0xc] sm:$0xf] }
 0xab7   :  { %v943_v7 = vsel %vm334_vm6, %v942_v49, -inf }
 0xab8   :  { %944 = vmax.xlane.f32.xlu0 %v943_v7 }
 0xace   :  { %955 = vrot.lane.b32.xlu0 %v3323_v24, %s3796_s20 }
 0xad2   :  { %1079 = vrot.lane.b32.xlu0 %v1076_v17, %s3789_s2  ;;  %s3790_s2 = smov 72  }
 0xb45   :  { %v945_v18 = vpop.xlane.xlu0 %944 }
 0xb46   :  { %v946_v53 = vsub.f32 %v942_v49, %v945_v18 }
 0xb48   :  { %v947_v19 = vmul.f32 1.442695, %v946_v53 }
 0xb49   :  { %v956_v21 = vpop.permute.xlu0 %955 }
 0xb4a   :  { %2924 = vpow2.f32 %v947_v19  ;;  %v961_v61 = vsel %vm577_vm13, %v956_v21, 0 }
 0xb4b   :  { %2697 = vmatpush3.bf16.msra.mxu0 %v961_v61 }
 0xb4c   :  { %2708 = vmatprep.subr.bf16.mxu0 %v2989_v1 }
 0xb4d   :  { %v1080_v43 = vpop.permute.xlu0 %1079 }
 0xb54   :  { %v2925_v22 = vpop.eup %2924 }
 0xb55   :  { %v949_v23 = vsel %vm334_vm6, %v2925_v22, 0.0 }
 0xb56   :  { %950 = vadd.xlane.f32.xlu1 %v949_v23 }
 0xb67   :  { %1082 = vrot.lane.b32.xlu1 %v1077_v28, %s3790_s2 }
 0xbe3   :  { %v951_v29 = vpop.xlane.xlu1 %950 }
 0xbe4   :  { %2926 = vrcp.f32 %v951_v29 }
 0xbe7   :  { %v1083_v34 = vpop.permute.xlu1 %1082 }
 0xbe8   :  { %v1088_v36 = vsel %vm334_vm6, %v1083_v34, 0 }
 0xbee   :  { %v2927_v31 = vpop.eup %2926 }
 0xbef   :  { %v953_v32 = vmul.f32 %v2927_v31, %v2925_v22  ;;  %v2898_v31 = vld [vmem:[%s3783_s15] sm:$0xff]  }
 0xbf1   :  { %v954_v35 = vpack.c.bf16 %v953_v32, %v953_v32  ;;  %v2899_v32 = vld [vmem:[%s3783_s15 + $0x8] sm:$0xff]  }
 0xbf3   :  { %2699 = vmatmul.mubr.msk.bf16.vlgmr.msra.gmra.mrb[12].mxu0 %vm334_vm6, %v954_v35 }
 0xbf4   :  { %2709 = vmatpush3.bf16.xpose.msra.mxu0 %v1088_v36  ;;  %2710 = vmatprep.mubr.msk.bf16.mxu0 %vm2990_vm0, %v2989_v1  ;;  %v1241_v36 = vld [vmem:[%s3782_s14] sm:$0x1] }
 0xbf5   :  { %2720 = vmatprep.subr.bf16.mxu0 %v2989_v1 }
 0xbfb   :  { %2711 = vmatmul.mubr.msk.bf16.vlgmr.msra.gmra.mrb[16].mxu0 %vm334_vm6, %v1080_v43  ;;  %v1250_v43 = vunpack.c.l.bf16 %v1241_v36 }
 0xbfc   :  { %2722 = vmatprep.mubr.msk.bf16.mxu0 %vm2990_vm0, %v2989_v1 }
 0xbfd   :  { %v1254_v37 = vrot.slane %v1250_v43, %v3152_v11 }
 0xcc6   :  { %v997_v39 = vpop.f32.mrb[12].mxu0 }
 0xcc7   :  { %v1003_v40 = vpack.c.bf16 %v997_v39, %v997_v39  ;;  %v2700_v41 = vpop.f32.mrb[13].mxu0 }
 0xcc8   :  { %v1000_v42 = vpop.f32.mrb[14].mxu0 }
 0xcc9   :  { %v2701_v44 = vpop.f32.mrb[15].mxu0  ;;  %2705 = vmatmul.mubr.msk.bf16.vlgmr.msra.gmra.mrb[32].mxu1 %vm334_vm6, %v1003_v40  ;;  %v2900_v42 = vld [vmem:[%s3784_s16] sm:$0xff]  }
 0xcca   :  { %2716 = vmatprep.mubr.msk.bf16.mxu1 %vm2990_vm0, %v2989_v1  ;;  %v2901_v44 = vld [vmem:[%s3784_s16 + $0x8] sm:$0xff]  }
 0xcce   :  { %v1124_v45 = vpop.f32.mrb[16].mxu0 }
 0xccf   :  { %v1130_v46 = vmul.f32 0.35355338, %v1124_v45  ;;  %v2712_v50 = vpop.f32.mrb[17].mxu0  ;;  %v2902_v45 = vld [vmem:[%s3784_s16 + $0x10] sm:$0xff]  }
 0xcd0   :  { %v1127_v51 = vpop.f32.mrb[18].mxu0 }
 0xcd1   :  { %v2713_v52 = vpop.f32.mrb[19].mxu0  ;;  %v1131_v54 = vsel %vm3159_vm5, %v1130_v46, -1e+30  ;;  %v2903_v46 = vld [vmem:[%s3784_s16 + $0x18] sm:$0xff]  }
 0xcd2   :  { %v1132_v55 = vsel %vm334_vm6, %v1131_v54, -inf }
 0xcd3   :  { %1133 = vmax.xlane.f32.xlu0 %v1132_v55 }
 0xce9   :  { %1144 = vrot.lane.b32.xlu0 %v3323_v24, %s3000_s27  ;;  %v1197_v24 = vsel %vm577_vm13, %v474_v3, 0 }
 0xcea   :  { %2721 = vmatpush3.bf16.msra.mxu0 %v1197_v24 }
 0xceb   :  { %2734 = vmatprep.subr.bf16.mxu0 %v2989_v1 }
 0xd60   :  { %v1134_v57 = vpop.xlane.xlu0 %1133 }
 0xd61   :  { %v1135_v58 = vsub.f32 %v1131_v54, %v1134_v57 }
 0xd63   :  { %v1136_v59 = vmul.f32 1.442695, %v1135_v58 }
 0xd64   :  { %v1145_v62 = vpop.permute.xlu0 %1144 }
 0xd65   :  { %2928 = vpow2.f32 %v1136_v59  ;;  %v1150_v63 = vsel %vm577_vm13, %v1145_v62, 0 }
 0xd66   :  { %2715 = vmatpush3.bf16.msra.mxu1 %v1150_v63 }
 0xd67   :  { %2726 = vmatprep.subr.bf16.mxu1 %v2989_v1 }
 0xd6f   :  { %v2929_v0 = vpop.eup %2928 }
 0xd70   :  { %v1138_v2 = vsel %vm334_vm6, %v2929_v0, 0.0 }
 0xd71   :  { %1139 = vadd.xlane.f32.xlu1 %v1138_v2 }
 0xd9c   :  { %v1044_v4 = vpop.f32.mrb[32].mxu1 }
 0xd9d   :  { %v1050_v5 = vadd.f32 %v1044_v4, %v3419_v60  ;;  %v2706_v6 = vpop.f32.mrb[33].mxu1 }
 0xd9e   :  { %v1047_v49 = vpop.f32.mrb[34].mxu1 }
 0xd9f   :  { %v2707_v7 = vpop.f32.mrb[35].mxu1 }
 0xdfe   :  { %v1140_v10 = vpop.xlane.xlu1 %1139 }
 0xdff   :  { %2930 = vrcp.f32 %v1140_v10  ;;  %v2904_v10 = vld [vmem:[%s3779_s11 + $0x10] sm:$0xff]  }
 0xe09   :  { %v2931_v13 = vpop.eup %2930 }
 0xe0a   :  { %v1142_v14 = vmul.f32 %v2931_v13, %v2929_v0  ;;  %v2905_v13 = vld [vmem:[%s3779_s11 + $0x18] sm:$0xff]  }
 0xe0c   :  { %v1143_v16 = vpack.c.bf16 %v1142_v14, %v1142_v14 }
 0xe0e   :  { %2717 = vmatmul.mubr.msk.bf16.vlgmr.msra.gmra.mrb[36].mxu1 %vm334_vm6, %v1143_v16 }
 0xe0f   :  { %2730 = vmatprep.mubr.msk.bf16.mxu1 %vm2990_vm0, %v2989_v1  ;;  %2727 = vmatpush3.bf16.msra.mxu1 %v2898_v31 }
 0xe10   :  { %2728 = vmatprep.subr.bf16.mxu1 %v2989_v1 }
 0xe13   :  { %2729 = vmatpush3.bf16.msra.mxu1 %v2899_v32 }
 0xe14   :  { %2746 = vmatprep.subr.bf16.mxu1 %v2989_v1 }
 0xee1   :  { %v1186_v17 = vpop.f32.mrb[36].mxu1 }
 0xee2   :  { %v1192_v18 = vpack.c.bf16 %v1186_v17, %v1186_v17  ;;  %v2718_v53 = vpop.f32.mrb[37].mxu1 }
 0xee3   :  { %v1189_v19 = vpop.f32.mrb[38].mxu1 }
 0xee4   :  { %v2719_v21 = vpop.f32.mrb[39].mxu1  ;;  %2723 = vmatmul.mubr.msk.bf16.vlgmr.msra.gmra.mrb[20].mxu0 %vm334_vm6, %v1192_v18  ;;  %v2478_v18 = vld [vmem:[%s3778_s10 + $0x1] sm:$0x1]  ;;  %s3807_s10 = smov 108  }
 0xee5   :  { %2742 = vmatprep.mubr.msk.bf16.mxu0 %vm2990_vm0, %v2989_v1  ;;  %2735 = vmatpush3.bf16.msra.mxu0 %v2900_v42  ;;  %v1416_v53 = vunpack.c.l.bf16 %v2478_v18 }
 0xee6   :  { %2736 = vmatprep.subr.bf16.mxu0 %v2989_v1 }
 0xee7   :  { %v1420_v19 = vrot.slane %v1416_v53, %v3152_v11 }
 0xee9   :  { %2737 = vmatpush3.bf16.msra.mxu0 %v2901_v44 }
 0xeea   :  { %2738 = vmatprep.subr.bf16.mxu0 %v2989_v1 }
 0xeed   :  { %2739 = vmatpush3.bf16.msra.mxu0 %v2902_v45 }
 0xeee   :  { %2740 = vmatprep.subr.bf16.mxu0 %v2989_v1 }
 0xef1   :  { %2741 = vmatpush3.bf16.msra.mxu0 %v2903_v46 }
 0xef2   :  { %2760 = vmatprep.subr.bf16.mxu0 %v2989_v1 }
 0xfb7   :  { %v1233_v60 = vpop.f32.mrb[20].mxu0 }
 0xfb8   :  { %v1239_v61 = vadd.f32 %v1233_v60, %v1050_v5  ;;  %v2724_v22 = vpop.f32.mrb[21].mxu0 }
 0xfb9   :  { %v1236_v23 = vpop.f32.mrb[22].mxu0 }
 0xfba   :  { %v1240_v26 = vadd.f32 %v1239_v61, %v3227_v25  ;;  %v2725_v27 = vpop.f32.mrb[23].mxu0  ;;  %v2483_v23 = vld [vmem:[%s3780_s12 + $0x1] sm:$0x1]  ;;  %s3808_s12 = smov 48  }
 0xfbc   :  { %v1242_v28 = vmul.f32 %v1240_v26, %v1240_v26 }
 0xfbe   :  { %v1243_v29 = vsel %vm84_vm3, %v1242_v28, 0.0 }
 0xfbf   :  { %1244 = vadd.xlane.f32.xlu1 %v1243_v29 }
0x104c   :  { %v1245_v25 = vpop.xlane.xlu1 %1244 }
0x104d   :  { %v1246_v34 = vmul.f32 0.03125, %v1245_v25 }
0x104f   :  { %v1247_v35 = vadd.f32 1e-06, %v1246_v34 }
0x1051   :  { %2932 = vrsqrt.f32 %v1247_v35 }
0x105b   :  { %v2933_v38 = vpop.eup %2932 }
0x105c   :  { %v1249_v39 = vmul.f32 %v2933_v38, %v1240_v26 }
0x105e   :  { %v1255_v40 = vmul.f32 %v1254_v37, %v1249_v39 }
0x1060   :  { %v1256_v41 = vpack.c.bf16 %v1255_v40, %v1255_v40 }
0x1062   :  { %2731 = vmatmul.mubr.msk.bf16.vlgmr.msra.gmra.mrb[40].mxu1 %vm84_vm3, %v1256_v41 }
0x1063   :  { %2750 = vmatprep.mubr.msk.bf16.mxu1 %vm2990_vm0, %v2989_v1  ;;  %2747 = vmatpush3.bf16.msra.mxu1 %v2904_v10 }
0x1064   :  { %2748 = vmatprep.subr.bf16.mxu1 %v2989_v1 }
0x1067   :  { %2749 = vmatpush3.bf16.msra.mxu1 %v2905_v13 }
0x1068   :  { %2754 = vmatprep.subr.bf16.mxu1 %v2989_v1 }
0x1135   :  { %v1310_v50 = vpop.f32.mrb[40].mxu1 }
0x1136   :  { %1324 = vrot.lane.b32.xlu1 %v1310_v50, %s3005_s29  ;;  %v2732_v51 = vpop.f32.mrb[41].mxu1  ;;  %v2472_v55 = vmul.f32 -1.442695, %v1310_v50 }
0x1137   :  { %v1313_v52 = vpop.f32.mrb[42].mxu1 }
0x1138   :  { %v2733_v54 = vpop.f32.mrb[43].mxu1  ;;  %2934 = vpow2.f32 %v2472_v55 }
0x1142   :  { %v2935_v57 = vpop.eup %2934 }
0x1143   :  { %v1319_v58 = vadd.f32 1.0, %v2935_v57 }
0x1145   :  { %2936 = vrcp.f32 %v1319_v58 }
0x114f   :  { %v2937_v59 = vpop.eup %2936 }
0x1150   :  { %v1322_v62 = vmul.f32 %v2937_v59, %v1310_v50 }
0x11a8   :  { %v1325_v63 = vpop.permute.xlu1 %1324 }
0x11a9   :  { %v1327_v0 = vmul.f32 %v1325_v63, %v1322_v62 }
0x11ab   :  { %v1328_v2 = vpack.c.bf16 %v1327_v0, %v1327_v0 }
0x11ad   :  { %2743 = vmatmul.mubr.msk.bf16.vlgmr.msra.gmra.mrb[24].mxu0 %vm1361_vm14, %v1328_v2 }
0x11ae   :  { %2762 = vmatprep.mubr.msk.bf16.mxu0 %vm2990_vm0, %v2989_v1 }
0x1280   :  { %v1399_v3 = vpop.f32.mrb[24].mxu0 }
0x1281   :  { %v3512_v24 = vadd.f32 %v1399_v3, %v1240_v26  ;;  %v2744_v4 = vpop.f32.mrb[25].mxu0  ;;  %v1430_v26 = vunpack.c.l.bf16 %v2483_v23 }
0x1282   :  { %v1402_v5 = vpop.f32.mrb[26].mxu0 }
0x1283   :  { %v2745_v6 = vpop.f32.mrb[27].mxu0  ;;  %v1408_v49 = vmul.f32 %v3512_v24, %v3512_v24  ;;  %v1434_v27 = vrot.slane %v1430_v26, %v3152_v11 }
0x1285   :  { %v1409_v7 = vsel %vm84_vm3, %v1408_v49, 0.0 }
0x1286   :  { %1410 = vadd.xlane.f32.xlu0 %v1409_v7 }
0x1313   :  { %v1411_v14 = vpop.xlane.xlu0 %1410 }
0x1314   :  { %v1412_v16 = vmul.f32 0.03125, %v1411_v14 }
0x1316   :  { %v1413_v17 = vadd.f32 1e-06, %v1412_v16 }
0x1318   :  { %2938 = vrsqrt.f32 %v1413_v17 }
0x1322   :  { %v2939_v21 = vpop.eup %2938 }
0x1323   :  { %v1415_v60 = vmul.f32 %v2939_v21, %v3512_v24 }
0x1325   :  { %v1421_v61 = vmul.f32 %v1420_v19, %v1415_v60 }
0x1327   :  { %v1422_v22 = vpack.c.bf16 %v1421_v61, %v1421_v61 }
0x1329   :  { %2751 = vmatmul.mubr.msk.bf16.vlgmr.msra.gmra.mrb[44].mxu1 %vm84_vm3, %v1422_v22 }
0x132a   :  { %2756 = vmatprep.mubr.msk.bf16.mxu1 %vm2990_vm0, %v2989_v1 }
0x13fc   :  { %v1484_v28 = vpop.f32.mrb[44].mxu1 }
0x13fd   :  { %v3537_v29 = vadd.f32 %v1484_v28, %v1434_v27  ;;  %v2752_v31 = vpop.f32.mrb[45].mxu1 }
0x13fe   :  { %v1487_v32 = vpop.f32.mrb[46].mxu1 }
0x13ff   :  { %1636 = vrot.lane.b32.xlu0 %v3537_v29, %s2999_s26  ;;  %1506 = vrot.lane.b32.xlu1 %v3537_v29, %s2996_s22  ;;  %v2753_v25 = vpop.f32.mrb[47].mxu1  ;;  %v1513_v45 = vmul.f32 %v3537_v29, %v3292_v56  ;;  %v1651_v54 = vmul.f32 %v3537_v29, %v3317_v20  ;;  %v1640_v57 = vmul.f32 %v3537_v29, %v3331_v33  ;;  %s3810_s22 = smov 16   ;;  %s3813_s26 = smov 112  }
0x1400   :  { %v1503_v2 = vmul.f32 %v3537_v29, %v3261_v47  ;;  %v3600_v26 = vpack.c.bf16 %v3537_v29, %v3537_v29 }
0x1403   :  { %1509 = vrot.lane.b32.xlu1 %v3537_v29, %s2995_s21  ;;  %s3809_s21 = smov 56  }
0x1407   :  { %1647 = vrot.lane.b32.xlu1 %v3537_v29, %s2997_s24  ;;  %s3811_s24 = smov 80  }
0x140b   :  { %1496 = vrot.lane.b32.xlu1 %v3537_v29, %s3001_s7  ;;  %s3019_s7 = smov [#allocation2]  }
0x1471   :  { %v1507_v34 = vpop.permute.xlu1 %1506  ;;  %v3560_v40 = vpop.permute.xlu0 %1636 }
0x1475   :  { %v3549_v35 = vpop.permute.xlu1 %1509 }
0x1476   :  { %v1512_v36 = vsel %vm482_vm12, %v1507_v34, %v3549_v35 }
0x1477   :  { %v1514_v43 = vmul.f32 %v1512_v36, %v3274_v48 }
0x1479   :  { %1516 = vrot.lane.b32.xlu1 %v1514_v43, %s2998_s25  ;;  %v3555_v37 = vpop.permute.xlu1 %1647  ;;  %s3812_s25 = smov 68  }
0x147a   :  { %v1650_v38 = vsel %vm482_vm12, %v3555_v37, %v1507_v34 }
0x147b   :  { %v1652_v39 = vmul.f32 %v1650_v38, %v3274_v48 }
0x147d   :  { %1654 = vrot.lane.b32.xlu1 %v1652_v39, %s3000_s27  ;;  %v1497_v41 = vpop.permute.xlu1 %1496 }
0x147e   :  { %v1639_v42 = vsel %vm482_vm12, %v3560_v40, %v1497_v41 }
0x147f   :  { %v1641_v44 = vmul.f32 %v1639_v42, %v3274_v48 }
0x1481   :  { %1643 = vrot.lane.b32.xlu1 %v1641_v44, %s3002_s4  ;;  %s2426_s4 = sshll.u32 %s3019_s7, 4  ;;  %s2427_s4 = int_to_ptr.vmem [resolvable:$true] %s2426_s4 }
0x1482   :  { %p2970_p1 = scmp.lt.s32.totalorder %s2427_s4, %s2427_s4 }
0x14eb   :  { %v1517_v46 = vpop.permute.xlu1 %1516 }
0x14ec   :  { %v1519_v50 = vadd.f32 %v1517_v46, %v1513_v45 }
0x14ee   :  { %v1521_v51 = vpack.c.bf16 %v1519_v50, %v1519_v50 }
0x14ef   :  { %v1655_v52 = vpop.permute.xlu1 %1654 }
0x14f0   :  { %1523 = vrot.lane.b32.xlu1 %v1521_v51, %s3003_s28  ;;  %v1657_v55 = vadd.f32 %v1655_v52, %v1651_v54  ;;  %v1882_v52 = vmul.f32 %v3537_v29, %v3387_v9  ;;  %s3814_s28 = smov 24  }
0x14f2   :  { %v1659_v62 = vpack.c.bf16 %v1657_v55, %v1657_v55 }
0x14f3   :  { %v1644_v58 = vpop.permute.xlu1 %1643 }
0x14f4   :  { %v1646_v59 = vadd.f32 %v1644_v58, %v1640_v57  ;;  %1499 = vrot.lane.b32.xlu1 %v3537_v29, %s3004_s6 }
0x14f6   :  { %v1658_v56 = vpack.c.bf16 %v1646_v59, %v1646_v59 }
0x14f8   :  { %1661 = vrot.lane.b32.xlu0 %v1658_v56, %s3007_s0  ;;  %1664 = vrot.lane.b32.xlu1 %v1659_v62, %s3006_s30 }
0x1562   :  { %v1524_v63 = vpop.permute.xlu1 %1523 }
0x1563   :  { %v1529_v20 = vsel %vm334_vm6, %v1524_v63, 0  ;;  %v1871_v63 = vmul.f32 %v3537_v29, %v3391_v30 }
0x1564   :  { %2755 = vmatpush3.bf16.xpose.msra.mxu1 %v1529_v20 }
0x1565   :  { %2766 = vmatprep.subr.bf16.mxu1 %v2989_v1 }
0x1566   :  { %v1500_v0 = vpop.permute.xlu1 %1499 }
0x1567   :  { %v1502_v33 = vsel %vm482_vm12, %v1497_v41, %v1500_v0 }
0x1568   :  { %v1504_v3 = vmul.f32 %v1502_v33, %v3274_v48 }
0x156a   :  { %v1505_v4 = vadd.f32 %v1504_v3, %v1503_v2  ;;  %v1665_v5 = vpop.permute.xlu1 %1664  ;;  %v1662_v7 = vpop.permute.xlu0 %1661 }
0x156b   :  { %v1670_v49 = vsel %vm334_vm6, %v1665_v5, 0 }
0x156c   :  { %v1520_v6 = vpack.c.bf16 %v1505_v4, %v1505_v4 }
0x156e   :  { %2757 = vmatmul.mubr.msk.bf16.vlgmr.msra.gmra.mrb[48].mxu1 %vm334_vm6, %v1520_v6 }
0x156f   :  { %2767 = vmatpush3.bf16.xpose.msra.mxu1 %v1670_v49  ;;  %2768 = vmatprep.mubr.msk.bf16.mxu1 %vm2990_vm0, %v2989_v1  ;;  %v2964_v49 = vld [vmem:[%s3777_s9] sm:$0xff]  ;;  %s3815_s9 = smov 104  }
0x1570   :  { %2778 = vmatprep.subr.bf16.mxu1 %v2989_v1 }
0x1576   :  { %2769 = vmatmul.mubr.msk.bf16.vlgmr.msra.gmra.mrb[52].mxu1 %vm334_vm6, %v1662_v7 }
0x1577   :  { %2780 = vmatprep.mubr.msk.bf16.mxu1 %vm2990_vm0, %v2989_v1 }
0x1641   :  { %v1565_v47 = vpop.f32.mrb[48].mxu1 }
0x1642   :  { %v1571_v10 = vmul.f32 0.35355338, %v1565_v47  ;;  %v2758_v13 = vpop.f32.mrb[49].mxu1 }
0x1643   :  { %v1568_v14 = vpop.f32.mrb[50].mxu1  ;;  %v2487_v13 = vld [vmem:[%s3781_s13 + $0x10] sm:$0xf] }
0x1644   :  { %v2759_v16 = vpop.f32.mrb[51].mxu1  ;;  %v1572_v17 = vsel %vm3159_vm5, %v1571_v10, -1e+30  ;;  %v1825_v14 = vsel %vm577_vm13, %v2487_v13, 0 }
0x1645   :  { %v1573_v18 = vsel %vm334_vm6, %v1572_v17, -inf  ;;  %v2488_v16 = vld [vmem:[%s3781_s13 + $0x14] sm:$0xf] }
0x1646   :  { %1574 = vmax.xlane.f32.xlu1 %v1573_v18 }
0x1649   :  { %v1706_v53 = vpop.f32.mrb[52].mxu1 }
0x164a   :  { %v1712_v19 = vmul.f32 0.35355338, %v1706_v53  ;;  %v2770_v21 = vpop.f32.mrb[53].mxu1 }
0x164b   :  { %v1709_v60 = vpop.f32.mrb[54].mxu1 }
0x164c   :  { %v2771_v61 = vpop.f32.mrb[55].mxu1  ;;  %v1713_v22 = vsel %vm3159_vm5, %v1712_v19, -1e+30 }
0x164d   :  { %v1714_v23 = vsel %vm334_vm6, %v1713_v22, -inf }
0x164e   :  { %1715 = vmax.xlane.f32.xlu0 %v1714_v23 }
0x1657   :  { %1587 = vrot.lane.b32.xlu1 %v3600_v26, %s3005_s29 }
0x165b   :  { %1878 = vrot.lane.b32.xlu1 %v3537_v29, %s3011_s3 }
0x165f   :  { %1867 = vrot.lane.b32.xlu1 %v3537_v29, %s3807_s10 }
0x16d3   :  { %v1575_v27 = vpop.xlane.xlu1 %1574 }
0x16d4   :  { %v1576_v28 = vsub.f32 %v1572_v17, %v1575_v27  ;;  %v1779_v17 = vsel %vm577_vm13, %v2488_v16, 0 }
0x16d5   :  { %2779 = vmatpush3.bf16.msra.mxu1 %v1779_v17 }
0x16d6   :  { %v1577_v31 = vmul.f32 1.442695, %v1576_v28  ;;  %2790 = vmatprep.subr.bf16.mxu1 %v2989_v1 }
0x16d7   :  { %v1588_v32 = vpop.permute.xlu1 %1587 }
0x16d8   :  { %2940 = vpow2.f32 %v1577_v31  ;;  %v1593_v25 = vsel %vm577_vm13, %v1588_v32, 0 }
0x16d9   :  { %2761 = vmatpush3.bf16.msra.mxu0 %v1593_v25 }
0x16da   :  { %2772 = vmatprep.subr.bf16.mxu0 %v2989_v1 }
0x16db   :  { %v1879_v34 = vpop.permute.xlu1 %1878  ;;  %v1716_v36 = vpop.xlane.xlu0 %1715 }
0x16dc   :  { %v1881_v43 = vsel %vm482_vm12, %v1879_v34, %v3555_v37  ;;  %v1717_v38 = vsub.f32 %v1713_v22, %v1716_v36 }
0x16dd   :  { %v1883_v39 = vmul.f32 %v1881_v43, %v3274_v48 }
0x16de   :  { %v1718_v41 = vmul.f32 1.442695, %v1717_v38 }
0x16df   :  { %1885 = vrot.lane.b32.xlu1 %v1883_v39, %s3808_s12  ;;  %v1868_v50 = vpop.permute.xlu1 %1867 }
0x16e0   :  { %2942 = vpow2.f32 %v1718_v41  ;;  %v1870_v51 = vsel %vm482_vm12, %v1868_v50, %v3560_v40  ;;  %v2053_v47 = vsel %vm482_vm12, %v3549_v35, %v1868_v50 }
0x16e1   :  { %v1872_v37 = vmul.f32 %v1870_v51, %v3274_v48  ;;  %v2055_v10 = vmul.f32 %v2964_v49, %v2053_v47 }
0x16e2   :  { %v2941_v42 = vpop.eup %2940 }
0x16e3   :  { %v1579_v44 = vsel %vm334_vm6, %v2941_v42, 0.0 }
0x16e4   :  { %1580 = vadd.xlane.f32.xlu0 %v1579_v44 }
0x16ea   :  { %v2943_v45 = vpop.eup %2942 }
0x16eb   :  { %v1720_v46 = vsel %vm334_vm6, %v2943_v45, 0.0 }
0x16ec   :  { %1721 = vadd.xlane.f32.xlu0 %v1720_v46 }
0x1702   :  { %1726 = vrot.lane.b32.xlu0 %v3600_v26, %s3809_s21 }
0x1706   :  { %1874 = vrot.lane.b32.xlu0 %v1872_v37, %s3810_s22 }
0x1751   :  { %v1886_v54 = vpop.permute.xlu1 %1885 }
0x1752   :  { %v1888_v55 = vadd.f32 %v1886_v54, %v1882_v52 }
0x1754   :  { %v1890_v57 = vpack.c.bf16 %v1888_v55, %v1888_v55 }
0x1756   :  { %1895 = vrot.lane.b32.xlu1 %v1890_v57, %s3811_s24  ;;  %v2054_v57 = vmul.f32 %v3537_v29, %v3426_v12 }
0x175a   :  { %2061 = vrot.lane.b32.xlu1 %v3537_v29, %s3812_s25 }
0x1771   :  { %v1581_v58 = vpop.xlane.xlu0 %1580 }
0x1772   :  { %2944 = vrcp.f32 %v1581_v58 }
0x1779   :  { %v1722_v40 = vpop.xlane.xlu0 %1721 }
0x177a   :  { %2946 = vrcp.f32 %v1722_v40 }
0x177c   :  { %v2945_v59 = vpop.eup %2944 }
0x177d   :  { %v1583_v62 = vmul.f32 %v2945_v59, %v2941_v42  ;;  %v1727_v48 = vpop.permute.xlu0 %1726 }
0x177e   :  { %v1732_v9 = vsel %vm577_vm13, %v1727_v48, 0 }
0x177f   :  { %v1584_v56 = vpack.c.bf16 %v1583_v62, %v1583_v62 }
0x1781   :  { %2763 = vmatmul.mubr.msk.bf16.vlgmr.msra.gmra.mrb[28].mxu0 %vm334_vm6, %v1584_v56  ;;  %v1875_v20 = vpop.permute.xlu0 %1874 }
0x1782   :  { %2773 = vmatpush3.bf16.msra.mxu0 %v1732_v9  ;;  %v1877_v0 = vadd.f32 %v1875_v20, %v1871_v63  ;;  %2774 = vmatprep.mubr.msk.bf16.mxu0 %vm2990_vm0, %v2989_v1  ;;  %v2065_v20 = vmul.f32 %v3537_v29, %v3424_v8  ;;  %v2489_v29 = vld [vmem:[%s3781_s13 + $0x18] sm:$0xf] }
0x1783   :  { %2784 = vmatprep.subr.bf16.mxu0 %v2989_v1 }
0x1784   :  { %v2947_v33 = vpop.eup %2946  ;;  %v1889_v2 = vpack.c.bf16 %v1877_v0, %v1877_v0 }
0x1785   :  { %v1724_v3 = vmul.f32 %v2947_v33, %v2943_v45 }
0x1786   :  { %1892 = vrot.lane.b32.xlu0 %v1889_v2, %s3813_s26 }
0x1787   :  { %v1725_v4 = vpack.c.bf16 %v1724_v3, %v1724_v3 }
0x1789   :  { %2775 = vmatmul.mubr.msk.bf16.vlgmr.msra.gmra.mrb[32].mxu0 %vm334_vm6, %v1725_v4 }
0x178a   :  { %2786 = vmatprep.mubr.msk.bf16.mxu0 %vm2990_vm0, %v2989_v1  ;;  %2785 = vmatpush3.bf16.msra.mxu0 %v1825_v14 }
0x178b   :  { %2796 = vmatprep.subr.bf16.mxu0 %v2989_v1 }
0x17c8   :  { %v1896_v30 = vpop.permute.xlu1 %1895 }
0x17c9   :  { %v1901_v27 = vsel %vm334_vm6, %v1896_v30, 0 }
0x17cc   :  { %v2062_v5 = vpop.permute.xlu1 %2061 }
0x17cd   :  { %v2064_v6 = vsel %vm482_vm12, %v2062_v5, %v1879_v34 }
0x17ce   :  { %v2066_v7 = vmul.f32 %v2964_v49, %v2064_v6  ;;  %v2010_v49 = vsel %vm577_vm13, %v2489_v29, 0 }
0x17d0   :  { %2068 = vrot.lane.b32.xlu1 %v2066_v7, %s3809_s21 }
0x17d4   :  { %2057 = vrot.lane.b32.xlu1 %v2055_v10, %s3814_s28  ;;  %s2965_s28 = scalar_lea.vmem %s2427_s4, 128 }
0x17d5   :  { %p2966_p0 = scmp.ne.s32.totalorder %s2427_s4, %s2965_s28  ;;  %p2971_p2 = scmp.lt.s32.totalorder %s2965_s28, %s2965_s28 }
0x17d7   :  { %p2972_p3 = por %p2971_p2, %p2970_p1 }
0x17d9   :  { %p2973_p4 = pnand %p2972_p3, %p2966_p0 }
0x17f8   :  { %v1893_v31 = vpop.permute.xlu0 %1892 }
0x1842   :  { %v2069_v54 = vpop.permute.xlu1 %2068 }
0x1843   :  { %v2071_v0 = vadd.f32 %v2069_v54, %v2065_v20 }
0x1845   :  { %v2073_v33 = vpack.c.bf16 %v2071_v0, %v2071_v0 }
0x1846   :  { %v2058_v55 = vpop.permute.xlu1 %2057 }
0x1847   :  { %v2060_v58 = vadd.f32 %v2058_v55, %v2054_v57 }
0x1849   :  { %v2072_v40 = vpack.c.bf16 %v2060_v58, %v2060_v58 }
0x1854   :  { %v1629_v35 = vpop.f32.mrb[28].mxu0 }
0x1855   :  { %v1635_v18 = vpack.c.bf16 %v1629_v35, %v1629_v35  ;;  %v2764_v53 = vpop.f32.mrb[29].mxu0 }
0x1856   :  { %v1632_v19 = vpop.f32.mrb[30].mxu0 }
0x1857   :  { %v2765_v21 = vpop.f32.mrb[31].mxu0  ;;  %2787 = vmatmul.mubr.msk.bf16.vlgmr.msra.gmra.mrb[36].mxu0 %vm334_vm6, %v1635_v18 }
0x1858   :  { %2798 = vmatprep.mubr.msk.bf16.mxu0 %vm2990_vm0, %v2989_v1 }
0x185c   :  { %v1768_v60 = vpop.f32.mrb[32].mxu0 }
0x185d   :  { %v1774_v61 = vpack.c.bf16 %v1768_v60, %v1768_v60  ;;  %v2776_v22 = vpop.f32.mrb[33].mxu0 }
0x185e   :  { %v1771_v23 = vpop.f32.mrb[34].mxu0 }
0x185f   :  { %v2777_v28 = vpop.f32.mrb[35].mxu0  ;;  %2781 = vmatmul.mubr.msk.bf16.vlgmr.msra.gmra.mrb[56].mxu1 %vm334_vm6, %v1774_v61 }
0x1860   :  { %2791 = vmatpush3.bf16.xpose.msra.mxu1 %v1901_v27  ;;  %2792 = vmatprep.mubr.msk.bf16.mxu1 %vm2990_vm0, %v2989_v1 }
0x1861   :  { %2802 = vmatprep.subr.bf16.mxu1 %v2989_v1 }
0x1867   :  { %2793 = vmatmul.mubr.msk.bf16.vlgmr.msra.gmra.mrb[60].mxu1 %vm334_vm6, %v1893_v31  ;;  %v2490_v31 = vld [vmem:[%s3781_s13 + $0x1c] sm:$0xf] }
0x1868   :  { %2804 = vmatprep.mubr.msk.bf16.mxu1 %vm2990_vm0, %v2989_v1  ;;  %2803 = vmatpush3.bf16.msra.mxu1 %v2010_v49 }
0x1869   :  { %2814 = vmatprep.subr.bf16.mxu1 %v2989_v1 }
0x192a   :  { %v1861_v32 = vpop.f32.mrb[36].mxu0 }
0x192b   :  { %v2788_v25 = vpop.f32.mrb[37].mxu0 }
0x192c   :  { %v1864_v34 = vpop.f32.mrb[38].mxu0 }
0x192d   :  { %v2789_v36 = vpop.f32.mrb[39].mxu0 }
0x1932   :  { %v1815_v43 = vpop.f32.mrb[56].mxu1 }
0x1933   :  { %v3667_v38 = vadd.f32 %v1861_v32, %v1815_v43  ;;  %v2782_v39 = vpop.f32.mrb[57].mxu1 }
0x1934   :  { %v1818_v41 = vpop.f32.mrb[58].mxu1 }
0x1935   :  { %v2783_v42 = vpop.f32.mrb[59].mxu1 }
0x193a   :  { %v1937_v44 = vpop.f32.mrb[60].mxu1 }
0x193b   :  { %v1943_v45 = vmul.f32 0.35355338, %v1937_v44  ;;  %v2794_v46 = vpop.f32.mrb[61].mxu1 }
0x193c   :  { %v1940_v50 = vpop.f32.mrb[62].mxu1 }
0x193d   :  { %v2795_v51 = vpop.f32.mrb[63].mxu1  ;;  %v1944_v37 = vsel %vm3159_vm5, %v1943_v45, -1e+30 }
0x193e   :  { %v1945_v52 = vsel %vm334_vm6, %v1944_v37, -inf }
0x193f   :  { %1946 = vmax.xlane.f32.xlu0 %v1945_v52 }
0x1955   :  { %1957 = vrot.lane.b32.xlu0 %v3600_v26, %s3808_s12 }
0x1959   :  { %2075 = vrot.lane.b32.xlu0 %v2072_v40, %s3815_s9 }
0x19cc   :  { %v1947_v59 = vpop.xlane.xlu0 %1946 }
0x19cd   :  { %v1948_v62 = vsub.f32 %v1944_v37, %v1947_v59 }
0x19cf   :  { %v1949_v48 = vmul.f32 1.442695, %v1948_v62  ;;  %v2906_v62 = vld [vmem:[%s3783_s15 + $0x10] sm:$0xff]  }
0x19d0   :  { %v1958_v56 = vpop.permute.xlu0 %1957 }
0x19d1   :  { %2948 = vpow2.f32 %v1949_v48  ;;  %v1963_v63 = vsel %vm577_vm13, %v1958_v56, 0  ;;  %v2907_v48 = vld [vmem:[%s3783_s15 + $0x18] sm:$0xff]  }
0x19d2   :  { %2797 = vmatpush3.bf16.msra.mxu0 %v1963_v63 }
0x19d3   :  { %2808 = vmatprep.subr.bf16.mxu0 %v2989_v1 }
0x19d4   :  { %v2076_v8 = vpop.permute.xlu0 %2075 }
0x19db   :  { %v2949_v9 = vpop.eup %2948 }
0x19dc   :  { %v1951_v12 = vsel %vm334_vm6, %v2949_v9, 0.0 }
0x19dd   :  { %1952 = vadd.xlane.f32.xlu1 %v1951_v12 }
0x19ee   :  { %2078 = vrot.lane.b32.xlu1 %v2073_v33, %s3816_s1 }
0x1a6a   :  { %v1953_v2 = vpop.xlane.xlu1 %1952 }
0x1a6b   :  { %2950 = vrcp.f32 %v1953_v2 }
0x1a6e   :  { %v2079_v30 = vpop.permute.xlu1 %2078 }
0x1a6f   :  { %v2084_v6 = vsel %vm334_vm6, %v2079_v30, 0  ;;  %v2909_v30 = vld [vmem:[%s3784_s16 + $0x28] sm:$0xff]  }
0x1a75   :  { %v2951_v3 = vpop.eup %2950 }
0x1a76   :  { %v1955_v4 = vmul.f32 %v2951_v3, %v2949_v9  ;;  %v2503_v9 = vld [vmem:[%s3782_s14 + $0x1] sm:$0x1] }
0x1a77   :  { %v2247_v12 = vunpack.c.l.bf16 %v2503_v9 }
0x1a78   :  { %v1956_v5 = vpack.c.bf16 %v1955_v4, %v1955_v4  ;;  %v2908_v4 = vld [vmem:[%s3784_s16 + $0x20] sm:$0xff]  }
0x1a79   :  { %v2251_v20 = vrot.slane %v2247_v12, %v3152_v11 }
0x1a7a   :  { %2799 = vmatmul.mubr.msk.bf16.vlgmr.msra.gmra.mrb[40].mxu0 %vm334_vm6, %v1956_v5  ;;  %v2910_v5 = vld [vmem:[%s3784_s16 + $0x30] sm:$0xff]  }
0x1a7b   :  { %2809 = vmatpush3.bf16.xpose.msra.mxu0 %v2084_v6  ;;  %2810 = vmatprep.mubr.msk.bf16.mxu0 %vm2990_vm0, %v2989_v1  ;;  %v2911_v6 = vld [vmem:[%s3784_s16 + $0x38] sm:$0xff]  }
0x1a7c   :  { %2820 = vmatprep.subr.bf16.mxu0 %v2989_v1 }
0x1a82   :  { %2811 = vmatmul.mubr.msk.bf16.vlgmr.msra.gmra.mrb[44].mxu0 %vm334_vm6, %v2076_v8 }
0x1a83   :  { %2822 = vmatprep.mubr.msk.bf16.mxu0 %vm2990_vm0, %v2989_v1 }
0x1b4d   :  { %v1999_v7 = vpop.f32.mrb[40].mxu0 }
0x1b4e   :  { %v2005_v47 = vpack.c.bf16 %v1999_v7, %v1999_v7  ;;  %v2800_v10 = vpop.f32.mrb[41].mxu0 }
0x1b4f   :  { %v2002_v13 = vpop.f32.mrb[42].mxu0 }
0x1b50   :  { %v2801_v14 = vpop.f32.mrb[43].mxu0  ;;  %2805 = vmatmul.mubr.msk.bf16.vlgmr.msra.gmra.mrb[64].mxu1 %vm334_vm6, %v2005_v47 }
0x1b51   :  { %2816 = vmatprep.mubr.msk.bf16.mxu1 %vm2990_vm0, %v2989_v1 }
0x1b55   :  { %v2120_v16 = vpop.f32.mrb[44].mxu0 }
0x1b56   :  { %v2126_v17 = vmul.f32 0.35355338, %v2120_v16  ;;  %v2812_v35 = vpop.f32.mrb[45].mxu0 }
0x1b57   :  { %v2123_v18 = vpop.f32.mrb[46].mxu0 }
0x1b58   :  { %v2813_v53 = vpop.f32.mrb[47].mxu0  ;;  %v2127_v19 = vsel %vm3159_vm5, %v2126_v17, -1e+30 }
0x1b59   :  { %v2128_v21 = vsel %vm334_vm6, %v2127_v19, -inf }
0x1b5a   :  { %2129 = vmax.xlane.f32.xlu0 %v2128_v21 }
0x1b70   :  { %2140 = vrot.lane.b32.xlu0 %v3600_v26, %s3000_s27  ;;  %v2193_v26 = vsel %vm577_vm13, %v2490_v31, 0 }
0x1b71   :  { %2821 = vmatpush3.bf16.msra.mxu0 %v2193_v26 }
0x1b72   :  { %2834 = vmatprep.subr.bf16.mxu0 %v2989_v1 }
0x1be7   :  { %v2130_v60 = vpop.xlane.xlu0 %2129 }
0x1be8   :  { %v2131_v61 = vsub.f32 %v2127_v19, %v2130_v60 }
0x1bea   :  { %v2132_v22 = vmul.f32 1.442695, %v2131_v61 }
0x1beb   :  { %v2141_v23 = vpop.permute.xlu0 %2140 }
0x1bec   :  { %2952 = vpow2.f32 %v2132_v22  ;;  %v2146_v27 = vsel %vm577_vm13, %v2141_v23, 0 }
0x1bed   :  { %2815 = vmatpush3.bf16.msra.mxu1 %v2146_v27 }
0x1bee   :  { %2826 = vmatprep.subr.bf16.mxu1 %v2989_v1 }
0x1bf6   :  { %v2953_v28 = vpop.eup %2952 }
0x1bf7   :  { %v2134_v15 = vsel %vm334_vm6, %v2953_v28, 0.0 }
0x1bf8   :  { %2135 = vadd.xlane.f32.xlu1 %v2134_v15  ;;  %v2404_v15 = vld [vmem:[%s3785_s17] sm:$0x1] }
0x1bf9   :  { %v2413_v31 = vunpack.c.l.bf16 %v2404_v15 }
0x1bfb   :  { %v2417_v26 = vrot.slane %v2413_v31, %v3152_v11 }
0x1c23   :  { %v2046_v32 = vpop.f32.mrb[64].mxu1 }
0x1c24   :  { %v2052_v25 = vadd.f32 %v2046_v32, %v3667_v38  ;;  %v2806_v34 = vpop.f32.mrb[65].mxu1 }
0x1c25   :  { %v2049_v36 = vpop.f32.mrb[66].mxu1 }
0x1c26   :  { %v2807_v43 = vpop.f32.mrb[67].mxu1 }
0x1c85   :  { %v2136_v39 = vpop.xlane.xlu1 %2135 }
0x1c86   :  { %2954 = vrcp.f32 %v2136_v39 }
0x1c90   :  { %v2955_v41 = vpop.eup %2954 }
0x1c91   :  { %v2138_v42 = vmul.f32 %v2955_v41, %v2953_v28 }
0x1c93   :  { %v2139_v44 = vpack.c.bf16 %v2138_v42, %v2138_v42 }
0x1c95   :  { %2817 = vmatmul.mubr.msk.bf16.vlgmr.msra.gmra.mrb[68].mxu1 %vm334_vm6, %v2139_v44 }
0x1c96   :  { %2830 = vmatprep.mubr.msk.bf16.mxu1 %vm2990_vm0, %v2989_v1  ;;  %2827 = vmatpush3.bf16.msra.mxu1 %v2906_v62 }
0x1c97   :  { %2828 = vmatprep.subr.bf16.mxu1 %v2989_v1 }
0x1c9a   :  { %2829 = vmatpush3.bf16.msra.mxu1 %v2907_v48 }
0x1d68   :  { %v2182_v45 = vpop.f32.mrb[68].mxu1 }
0x1d69   :  { %v2188_v46 = vpack.c.bf16 %v2182_v45, %v2182_v45  ;;  %v2818_v50 = vpop.f32.mrb[69].mxu1 }
0x1d6a   :  { %v2185_v51 = vpop.f32.mrb[70].mxu1 }
0x1d6b   :  { %v2819_v37 = vpop.f32.mrb[71].mxu1  ;;  %2823 = vmatmul.mubr.msk.bf16.vlgmr.msra.gmra.mrb[48].mxu0 %vm334_vm6, %v2188_v46 }
0x1d6c   :  { %2842 = vmatprep.mubr.msk.bf16.mxu0 %vm2990_vm0, %v2989_v1  ;;  %2835 = vmatpush3.bf16.msra.mxu0 %v2908_v4 }
0x1d6d   :  { %2836 = vmatprep.subr.bf16.mxu0 %v2989_v1 }
0x1d70   :  { %2837 = vmatpush3.bf16.msra.mxu0 %v2909_v30 }
0x1d71   :  { %2838 = vmatprep.subr.bf16.mxu0 %v2989_v1 }
0x1d74   :  { %2839 = vmatpush3.bf16.msra.mxu0 %v2910_v5 }
0x1d75   :  { %2840 = vmatprep.subr.bf16.mxu0 %v2989_v1 }
0x1d78   :  { %2841 = vmatpush3.bf16.msra.mxu0 %v2911_v6 }
0x1e3e   :  { %v2229_v38 = vpop.f32.mrb[48].mxu0 }
0x1e3f   :  { %v2235_v52 = vadd.f32 %v2229_v38, %v2052_v25  ;;  %v2824_v54 = vpop.f32.mrb[49].mxu0 }
0x1e40   :  { %v2232_v55 = vpop.f32.mrb[50].mxu0 }
0x1e41   :  { %v2236_v57 = vadd.f32 %v2235_v52, %v3512_v24  ;;  %v2825_v58 = vpop.f32.mrb[51].mxu0 }
0x1e43   :  { %v2239_v40 = vmul.f32 %v2236_v57, %v2236_v57 }
0x1e45   :  { %v2240_v59 = vsel %vm84_vm3, %v2239_v40, 0.0 }
0x1e46   :  { %2241 = vadd.xlane.f32.xlu1 %v2240_v59 }
0x1ed3   :  { %v2242_v56 = vpop.xlane.xlu1 %2241 }
0x1ed4   :  { %v2243_v63 = vmul.f32 0.03125, %v2242_v56 }
0x1ed6   :  { %v2244_v24 = vadd.f32 1e-06, %v2243_v63 }
0x1ed8   :  { %2956 = vrsqrt.f32 %v2244_v24 }
0x1ee2   :  { %v2957_v0 = vpop.eup %2956 }
0x1ee3   :  { %v2246_v33 = vmul.f32 %v2957_v0, %v2236_v57 }
0x1ee5   :  { %v2252_v2 = vmul.f32 %v2251_v20, %v2246_v33 }
0x1ee7   :  { %v2253_v3 = vpack.c.bf16 %v2252_v2, %v2252_v2 }
0x1ee9   :  { %2831 = vmatmul.mubr.msk.bf16.vlgmr.msra.gmra.mrb[72].mxu1 %vm84_vm3, %v2253_v3 }
0x1fbc   :  { %v2308_v8 = vpop.f32.mrb[72].mxu1 }
0x1fbd   :  { %2322 = vrot.lane.b32.xlu1 %v2308_v8, %s3005_s29  ;;  %v2832_v29 = vpop.f32.mrb[73].mxu1  ;;  %v2511_v47 = vmul.f32 -1.442695, %v2308_v8 }
0x1fbe   :  { %v2311_v49 = vpop.f32.mrb[74].mxu1 }
0x1fbf   :  { %v2833_v7 = vpop.f32.mrb[75].mxu1  ;;  %2958 = vpow2.f32 %v2511_v47 }
0x1fc9   :  { %v2959_v10 = vpop.eup %2958 }
0x1fca   :  { %v2317_v13 = vadd.f32 1.0, %v2959_v10 }
0x1fcc   :  { %2960 = vrcp.f32 %v2317_v13 }
0x1fd6   :  { %v2961_v14 = vpop.eup %2960 }
0x1fd7   :  { %v2320_v16 = vmul.f32 %v2961_v14, %v2308_v8 }
0x202f   :  { %v2323_v17 = vpop.permute.xlu1 %2322 }
0x2030   :  { %v2325_v1 = vmul.f32 %v2323_v17, %v2320_v16 }
0x2032   :  { %v2326_v35 = vpack.c.bf16 %v2325_v1, %v2325_v1 }
0x2034   :  { %2843 = vmatmul.mubr.msk.bf16.vlgmr.msra.gmra.mrb[52].mxu0 %vm1361_vm14, %v2326_v35 }
0x2107   :  { %v2397_v18 = vpop.f32.mrb[52].mxu0 }
0x2108   :  { %v2403_v53 = vadd.f32 %v2397_v18, %v2236_v57  ;;  %v2844_v19 = vpop.f32.mrb[53].mxu0 }
0x2109   :  { %v2400_v21 = vpop.f32.mrb[54].mxu0 }
0x210a   :  { %v2845_v60 = vpop.f32.mrb[55].mxu0  ;;  %v2405_v61 = vmul.f32 %v2403_v53, %v2403_v53 }
0x210c   :  { %v2406_v22 = vsel %vm84_vm3, %v2405_v61, 0.0 }
0x210d   :  { %2407 = vadd.xlane.f32.xlu0 %v2406_v22 }
0x219a   :  { %v2408_v23 = vpop.xlane.xlu0 %2407 }
0x219b   :  { %v2409_v27 = vmul.f32 0.03125, %v2408_v23 }
0x219d   :  { %v2410_v28 = vadd.f32 1e-06, %v2409_v27 }
0x219f   :  { %2962 = vrsqrt.f32 %v2410_v28 }
0x21a9   :  { %v2963_v32 = vpop.eup %2962 }
0x21aa   :  { %v2412_v25 = vmul.f32 %v2963_v32, %v2403_v53 }
0x21ac   :  { %v2418_v34 = vmul.f32 %v2417_v26, %v2412_v25 }
0x21ae   :  { %2419 = vst.msk [vmem:[#allocation2] sm:$0xff] %vm84_vm3, %v2418_v34 }
0x21af   :  { %2976 = shalt.err (!%p2973_p4)
}
0x21b0   :  { %s2977_s30 = scalar_lea.hbm %s3786_s18, 128 }
0x21b1   :  { %p2978_p5 = scmp.ne.s32.totalorder %s3786_s18, %s2977_s30  ;;  %p2981_p6 = scmp.lt.u32.totalorder %s2977_s30, %s3786_s18 }
0x21b3   :  { %p2983_p7 = pnand %p2981_p6, %p2978_p5 }
0x21b5   :  { %2986 = shalt.err (!%p2983_p7)
}
0x21b6   :  { %2429 = dma.vmem_to_hbm [thread:$0]  %s2427_s4, 128, %s3786_s18, [#allocation3]  }
0x21b7   :  { %2987 = dma.done.wait [#allocation3], 128  }
0x21b8   :  { %2988 = vsyncadd [#allocation3], 4294967168 }
0x21b9   :  { %2433 = vsyncpa [#allocation3], 1 }

</bundles_post_ra>
